<compile_context>
chip_gen: v7x
topology: tpu7x:2x2x1
jax: 0.10.0
libtpu: 0.0.40
codegen_flags: <defaults>
</compile_context>

<pallas_src>
import math

import numpy as np
import jax
import jax.numpy as jnp
from jax.experimental import pallas as pl
from jax.experimental.pallas import tpu as pltpu

EPS = 1e-5  # eps of nn.InstanceNorm2d


# ----------------------------------------------------------------------------
# Pallas kernel (one batch element per grid step, folded (H, W*C) layout)
# ----------------------------------------------------------------------------
def _make_kernel(H, W, C):
    WC = W * C
    inv_hw = 1.0 / float(H * W)

    def kernel(x_ref, m128_ref, m256_ref, vec_ref, o_ref):
        x = x_ref[0]                                   # (H, WC), f32

        vec = vec_ref[...]                             # (11, WC)
        b1, ga1, be1, db1 = vec[0:1], vec[1:2], vec[2:3], vec[3:4]
        b2, ga2, be2, db2 = vec[4:5], vec[5:6], vec[6:7], vec[7:8]
        bp, bg0, bg1 = vec[8:9], vec[9:10], vec[10:11]

        def mm(a, b):
            return jnp.dot(a, b, preferred_element_type=jnp.float32)

        def inorm_relu(t, gamma, beta):
            # Per-channel mean / mean-of-squares over (H, W), broadcast back to
            # the folded layout with one small matmul against R; the affine +
            # ReLU are fused into a single scale/shift + max pass.
            s = jnp.concatenate(
                [jnp.sum(t, axis=0, keepdims=True),
                 jnp.sum(t * t, axis=0, keepdims=True)], axis=0)      # (2, WC)
            sr = mm(s, m128_ref[2 * WC:3 * WC, :]) * inv_hw            # (2, WC)
            mu = sr[0:1]
            var = sr[1:2] - mu * mu
            scale = jax.lax.rsqrt(var + EPS) * gamma
            shift = beta - mu * scale
            return jnp.maximum(t * scale + shift, 0.0)

        def im2col_h_zero(t, d):
            # (H, WC) -> (H, 3*WC): the three H-direction taps (zero padded by
            # d rows).  W-direction taps/padding live inside the banded weight.
            z = jnp.zeros((d, WC), jnp.float32)
            tp = jnp.concatenate([z, t, z], axis=0)                    # (H+2d, WC)
            return jnp.concatenate(
                [tp[0:H], tp[d:d + H], tp[2 * d:2 * d + H]], axis=1)

        def im2col_h_reflect(t):
            # reflect padding (PyTorch 'reflect', edge excluded) in H.
            tp = jnp.concatenate([t[1:2], t, t[H - 2:H - 1]], axis=0)  # (H+2, WC)
            return jnp.concatenate([tp[0:H], tp[1:1 + H], tp[2:2 + H]], axis=1)

        # ---- Wv1: 1x1 conv -> InstanceNorm(affine)+ReLU -> depthwise 3x3 (reflect)
        t1 = mm(x, m128_ref[0:WC, :]) + b1
        t1 = inorm_relu(t1, ga1, be1)
        x1 = mm(im2col_h_reflect(t1), m128_ref[6 * WC:9 * WC, :]) + db1

        # ---- Wv2: 3x3 conv (dil=2, pad=2) -> InstanceNorm(affine)+ReLU -> dw 3x3 (reflect)
        t2 = mm(im2col_h_zero(x, 2), m128_ref[3 * WC:6 * WC, :]) + b2
        t2 = inorm_relu(t2, ga2, be2)
        x2 = mm(im2col_h_reflect(t2), m128_ref[9 * WC:12 * WC, :]) + db2

        # ---- gates = sigmoid(3x3 conv(cat(x1, x2))); only channels 0,1 are used.
        # Each gate channel comes out already replicated across the C lanes of
        # its w-block, so the gating below is a plain lane-wise multiply.
        g = (mm(im2col_h_zero(x1, 1), m256_ref[0:3 * WC, :]) +
             mm(im2col_h_zero(x2, 1), m256_ref[3 * WC:6 * WC, :]) +
             jnp.concatenate([bg0, bg1], axis=1))                      # (H, 2*WC)
        gates = 1.0 / (1.0 + jnp.exp(-g))      # exp on the EUP; one vector divide

        fused = x1 * gates[:, 0:WC] + x2 * gates[:, WC:2 * WC]

        # ---- proj 1x1
        out = mm(fused, m128_ref[WC:2 * WC, :]) + bp
        o_ref[0, :, :] = out.astype(o_ref.dtype)

    return kernel


def conv_layer_pallas(x_nchw, mats128, mats256, vecs):
    """ConvLayer forward.  x_nchw: (N, C, H, W) float32 (PyTorch layout)."""
    N, C, H, W = x_nchw.shape
    WC = W * C
    x = jnp.transpose(x_nchw, (0, 2, 3, 1)).reshape(N, H, WC)   # lane-dense slab

    out = pl.pallas_call(
        _make_kernel(H, W, C),
        out_shape=jax.ShapeDtypeStruct((N, H, WC), jnp.float32),
        grid=(N,),
        in_specs=[
            pl.BlockSpec((1, H, WC), lambda n: (n, 0, 0)),
            pl.BlockSpec(mats128.shape, lambda n: (0, 0)),
            pl.BlockSpec(mats256.shape, lambda n: (0, 0)),
            pl.BlockSpec(vecs.shape, lambda n: (0, 0)),
        ],
        out_specs=pl.BlockSpec((1, H, WC), lambda n: (n, 0, 0)),
        compiler_params=pltpu.CompilerParams(
            dimension_semantics=("parallel",)),
    )(x, mats128, mats256, vecs)

    return jnp.transpose(out.reshape(N, H, W, C), (0, 3, 1, 2))


# ----------------------------------------------------------------------------
# Host-side parameter packing (folds W-direction padding/reflection and the
# folded-layout structure into block-diagonal / banded weight matrices).
# ----------------------------------------------------------------------------
def pack_params(raw, W):
    (w1, b1, g1, be1, dw1, db1,
     w2, b2, g2, be2, dw2, db2,
     wg, bg, wp, bp) = raw
    C = w1.shape[0]
    WC = W * C
    eyeW = jnp.eye(W, dtype=jnp.float32)
    eyeC = jnp.eye(C, dtype=jnp.float32)
    onesC = jnp.ones((C,), jnp.float32)

    def shift_mat(off):
        # S[w_in, w_out] = 1 iff w_in == w_out + off (zero padding outside).
        return jnp.eye(W, W, k=-off, dtype=jnp.float32)

    def reflect_shift_mat(off):
        m = np.zeros((W, W), np.float32)
        for w_out in range(W):
            w_in = w_out + off
            if w_in < 0:
                w_in = -w_in                    # reflect (edge excluded)
            elif w_in >= W:
                w_in = 2 * W - 2 - w_in
            m[w_in, w_out] = 1.0
        return jnp.asarray(m)

    # 1x1 convs -> block-diagonal (WC, WC)
    W1_bd = jnp.kron(eyeW, w1)
    Wp_bd = jnp.kron(eyeW, wp)
    # channel-sum-and-broadcast matrix for the InstanceNorm statistics
    R = jnp.kron(jnp.ones((W, W), jnp.float32), eyeC)

    def banded_dense(w, dilation):              # w: (3,3,Cin,Cout)
        rows = []
        for kh in range(3):
            blk = jnp.zeros((WC, WC), jnp.float32)
            for kw in range(3):
                blk = blk + jnp.kron(shift_mat((kw - 1) * dilation), w[kh, kw])
            rows.append(blk)
        return jnp.concatenate(rows, axis=0)    # (3*WC, WC)

    def banded_depthwise(dw):                   # dw: (3,3,C)
        rows = []
        for kh in range(3):
            blk = jnp.zeros((WC, WC), jnp.float32)
            for kw in range(3):
                blk = blk + jnp.kron(reflect_shift_mat(kw - 1),
                                     jnp.diag(dw[kh, kw]))
            rows.append(blk)
        return jnp.concatenate(rows, axis=0)    # (3*WC, WC)

    def banded_gate(wg_half):                   # (3,3,C,3) -> (3*WC, 2*WC)
        rows = []
        for kh in range(3):
            cols = []
            for j in range(2):                  # gate channel 2 is never used
                blk = jnp.zeros((WC, WC), jnp.float32)
                for kw in range(3):
                    blk = blk + jnp.kron(
                        shift_mat(kw - 1),
                        jnp.outer(wg_half[kh, kw, :, j], onesC))
                cols.append(blk)
            rows.append(jnp.concatenate(cols, axis=1))
        return jnp.concatenate(rows, axis=0)

    W2_band = banded_dense(w2, 2)
    D1 = banded_depthwise(dw1)
    D2 = banded_depthwise(dw2)
    G1 = banded_gate(wg[:, :, :C, :])
    G2 = banded_gate(wg[:, :, C:, :])

    mats128 = jnp.concatenate([W1_bd, Wp_bd, R, W2_band, D1, D2], axis=0)  # (12*WC, WC)
    mats256 = jnp.concatenate([G1, G2], axis=0)                            # (6*WC, 2*WC)

    def fold(v):                               # (C,) -> (1, WC), folded layout
        return jnp.tile(v.astype(jnp.float32), W)[None, :]

    vecs = jnp.concatenate(
        [fold(b1), fold(g1), fold(be1), fold(db1),
         fold(b2), fold(g2), fold(be2), fold(db2),
         fold(bp),
         jnp.full((1, WC), bg[0], jnp.float32),
         jnp.full((1, WC), bg[1], jnp.float32)], axis=0)                   # (11, WC)

    return mats128, mats256, vecs


# ----------------------------------------------------------------------------
# Reference (plain XLA, NHWC, Precision.HIGHEST) and synthetic parameters
# ----------------------------------------------------------------------------
def conv_layer_reference(x_nchw, raw):
    (w1, b1, g1, be1, dw1, db1,
     w2, b2, g2, be2, dw2, db2,
     wg, bg, wp, bp) = raw
    hp = jax.lax.Precision.HIGHEST
    x = jnp.transpose(x_nchw, (0, 2, 3, 1)).astype(jnp.float32)   # NHWC
    N, H, W, C = x.shape

    def pw(t, w, b):
        return jnp.einsum("nhwi,io->nhwo", t, w, precision=hp) + b

    def inorm(t, gamma, beta):
        mu = jnp.mean(t, axis=(1, 2), keepdims=True)
        var = jnp.mean((t - mu) ** 2, axis=(1, 2), keepdims=True)
        return (t - mu) * jax.lax.rsqrt(var + EPS) * gamma + beta

    def conv3x3(t, w, b, dilation):
        p = dilation
        tp = jnp.pad(t, ((0, 0), (p, p), (p, p), (0, 0)))
        out = b
        for kh in range(3):
            for kw in range(3):
                tap = tp[:, kh * dilation:kh * dilation + H,
                         kw * dilation:kw * dilation + W, :]
                out = out + jnp.einsum("nhwi,io->nhwo", tap, w[kh, kw],
                                       precision=hp)
        return out

    def dwconv3x3_reflect(t, dw, b):
        tp = jnp.pad(t, ((0, 0), (1, 1), (1, 1), (0, 0)), mode="reflect")
        out = b
        for kh in range(3):
            for kw in range(3):
                out = out + tp[:, kh:kh + H, kw:kw + W, :] * dw[kh, kw]
        return out

    x1 = pw(x, w1, b1)
    x1 = jnp.maximum(inorm(x1, g1, be1), 0.0)
    x1 = dwconv3x3_reflect(x1, dw1, db1)

    x2 = conv3x3(x, w2, b2, dilation=2)
    x2 = jnp.maximum(inorm(x2, g2, be2), 0.0)
    x2 = dwconv3x3_reflect(x2, dw2, db2)

    g = conv3x3(jnp.concatenate([x1, x2], axis=-1), wg, bg, dilation=1)
    gates = jax.nn.sigmoid(g)
    out = x1 * gates[..., 0:1] + x2 * gates[..., 1:2]
    out = pw(out, wp, bp)
    return jnp.transpose(out, (0, 3, 1, 2))


def make_params(key, dim, net_depth):
    """Synthetic ConvLayer parameters.

    Conv weights follow the module's truncated-normal init scale.  Biases and
    InstanceNorm affine parameters get small random values (instead of the
    init-time zeros/ones) so the self-test exercises every folding path.
    """
    gain = (8.0 * net_depth) ** (-0.25)
    keys = iter(jax.random.split(key, 16))

    def trunc(shape, fan_in, fan_out):
        std = gain * math.sqrt(2.0 / float(fan_in + fan_out))
        return (std * jax.random.truncated_normal(next(keys), -2.0, 2.0, shape)
                ).astype(jnp.float32)

    def small(shape):
        return (0.1 * jax.random.normal(next(keys), shape)).astype(jnp.float32)

    c = dim
    w1 = trunc((c, c), c, c)                    # Wv1 1x1 conv  (Cin, Cout)
    b1 = small((c,))
    g1 = 1.0 + small((c,))                      # InstanceNorm2d weight
    be1 = small((c,))                           # InstanceNorm2d bias
    dw1 = trunc((3, 3, c), 9, 9 * c)            # depthwise 3x3 (kh, kw, C)
    db1 = small((c,))
    w2 = trunc((3, 3, c, c), 9 * c, 9 * c)      # dilated 3x3 conv (kh,kw,Cin,Cout)
    b2 = small((c,))
    g2 = 1.0 + small((c,))
    be2 = small((c,))
    dw2 = trunc((3, 3, c), 9, 9 * c)
    db2 = small((c,))
    wg = trunc((3, 3, 2 * c, 3), 9 * 2 * c, 9 * 3)   # gate conv (3rd out ch unused)
    bg = small((3,))
    wp = trunc((c, c), c, c)                    # proj 1x1 conv
    bp = small((c,))
    return (w1, b1, g1, be1, dw1, db1,
            w2, b2, g2, be2, dw2, db2,
            wg, bg, wp, bp)


if __name__ == "__main__":
    dim, net_depth = 8, 4
    n, h, w = 2, 16, 16            # NCHW input (2, 8, 16, 16); W*C = 128 lanes

    key = jax.random.PRNGKey(0)
    kx, kp = jax.random.split(key)
    x = jax.random.normal(kx, (n, dim, h, w), jnp.float32)
    raw = make_params(kp, dim, net_depth)
    mats128, mats256, vecs = pack_params(raw, w)

    run = jax.jit(conv_layer_pallas)
    out = jax.block_until_ready(run(x, mats128, mats256, vecs))
    ref = jax.block_until_ready(conv_layer_reference(x, raw))

    assert out.shape == x.shape and out.dtype == x.dtype
    max_err = float(jnp.max(jnp.abs(out - ref)))
    # Kernel matmuls run at default MXU f32 precision (bf16 passes); the
    # reference is Precision.HIGHEST, hence the few-1e-4-level slack below.
    # Layout / weight-packing bugs would produce O(1) errors and are caught.
    assert max_err < 3e-3, f"max_err={max_err}"
    print("KERNEL_OK")
</pallas_src>

<mosaic_0001>
module attributes {stable_mosaic.version = 11 : i64} {
  func.func @kernel(%arg0: i32, %arg1: memref<1x16x128xf32, #tpu.memory_space<vmem>>, %arg2: memref<1536x128xf32, #tpu.memory_space<vmem>>, %arg3: memref<768x256xf32, #tpu.memory_space<vmem>>, %arg4: memref<11x128xf32, #tpu.memory_space<vmem>>, %arg5: memref<1x16x128xf32, #tpu.memory_space<vmem>>) attributes {dimension_semantics = [#tpu.dimension_semantics<parallel>], iteration_bounds = array<i64: 2>, scalar_prefetch = 0 : i64, scratch_operands = 0 : i64, tpu.core_type = #tpu.core_type<tc>, window_params = [{transform_indices = @transform_0, window_bounds = array<i64: 1, 16, 128>}, {pipeline_mode = #tpu.pipeline_mode<synchronous>, transform_indices = @transform_1, window_bounds = array<i64: 1536, 128>}, {pipeline_mode = #tpu.pipeline_mode<synchronous>, transform_indices = @transform_2, window_bounds = array<i64: 768, 256>}, {pipeline_mode = #tpu.pipeline_mode<synchronous>, transform_indices = @transform_3, window_bounds = array<i64: 11, 128>}, {transform_indices = @transform_4, window_bounds = array<i64: 1, 16, 128>}]} {
    %c0 = arith.constant 0 : index
    %c0_0 = arith.constant 0 : index
    %c0_1 = arith.constant 0 : index
    %0 = vector.load %arg1[%c0, %c0_0, %c0_1] : memref<1x16x128xf32, #tpu.memory_space<vmem>>, vector<1x16x128xf32>
    %1 = vector.shape_cast %0 : vector<1x16x128xf32> to vector<16x128xf32>
    %c0_2 = arith.constant 0 : index
    %c0_3 = arith.constant 0 : index
    %2 = vector.load %arg4[%c0_2, %c0_3] : memref<11x128xf32, #tpu.memory_space<vmem>>, vector<11x128xf32>
    %3 = vector.extract_strided_slice %2 {offsets = [0, 0], sizes = [1, 128], strides = [1, 1]} : vector<11x128xf32> to vector<1x128xf32>
    %4 = vector.extract_strided_slice %2 {offsets = [1, 0], sizes = [1, 128], strides = [1, 1]} : vector<11x128xf32> to vector<1x128xf32>
    %5 = vector.extract_strided_slice %2 {offsets = [2, 0], sizes = [1, 128], strides = [1, 1]} : vector<11x128xf32> to vector<1x128xf32>
    %6 = vector.extract_strided_slice %2 {offsets = [3, 0], sizes = [1, 128], strides = [1, 1]} : vector<11x128xf32> to vector<1x128xf32>
    %7 = vector.extract_strided_slice %2 {offsets = [4, 0], sizes = [1, 128], strides = [1, 1]} : vector<11x128xf32> to vector<1x128xf32>
    %8 = vector.extract_strided_slice %2 {offsets = [5, 0], sizes = [1, 128], strides = [1, 1]} : vector<11x128xf32> to vector<1x128xf32>
    %9 = vector.extract_strided_slice %2 {offsets = [6, 0], sizes = [1, 128], strides = [1, 1]} : vector<11x128xf32> to vector<1x128xf32>
    %10 = vector.extract_strided_slice %2 {offsets = [7, 0], sizes = [1, 128], strides = [1, 1]} : vector<11x128xf32> to vector<1x128xf32>
    %11 = vector.extract_strided_slice %2 {offsets = [8, 0], sizes = [1, 128], strides = [1, 1]} : vector<11x128xf32> to vector<1x128xf32>
    %12 = vector.extract_strided_slice %2 {offsets = [9, 0], sizes = [1, 128], strides = [1, 1]} : vector<11x128xf32> to vector<1x128xf32>
    %13 = vector.extract_strided_slice %2 {offsets = [10, 0], sizes = [1, 128], strides = [1, 1]} : vector<11x128xf32> to vector<1x128xf32>
    %c0_4 = arith.constant 0 : index
    %c0_5 = arith.constant 0 : index
    %14 = vector.load %arg2[%c0_4, %c0_5] : memref<1536x128xf32, #tpu.memory_space<vmem>>, vector<128x128xf32>
    %cst = arith.constant dense<0.000000e+00> : vector<16x128xf32>
    %15 = tpu.matmul %1, %14, %cst {dimension_numbers = #tpu.dot_dimension_numbers<[1], [0], [0], [1], [0, 0, 1, 1], [], []>} : vector<16x128xf32>, vector<128x128xf32>, vector<16x128xf32> -> vector<16x128xf32>
    %16 = vector.broadcast %3 : vector<1x128xf32> to vector<16x128xf32>
    %17 = arith.addf %15, %16 : vector<16x128xf32>
    %cst_6 = arith.constant dense<0.000000e+00> : vector<128xf32>
    %18 = vector.multi_reduction <add>, %17, %cst_6 [0] : vector<16x128xf32> to vector<128xf32>
    %19 = vector.shape_cast %18 : vector<128xf32> to vector<1x128xf32>
    %20 = arith.mulf %17, %17 : vector<16x128xf32>
    %cst_7 = arith.constant dense<0.000000e+00> : vector<128xf32>
    %21 = vector.multi_reduction <add>, %20, %cst_7 [0] : vector<16x128xf32> to vector<128xf32>
    %22 = vector.shape_cast %21 : vector<128xf32> to vector<1x128xf32>
    %23 = tpu.concatenate %19, %22 in 0 : vector<1x128xf32>, vector<1x128xf32> -> vector<2x128xf32>
    %c256 = arith.constant 256 : index
    %c0_8 = arith.constant 0 : index
    %24 = vector.load %arg2[%c256, %c0_8] : memref<1536x128xf32, #tpu.memory_space<vmem>>, vector<128x128xf32>
    %cst_9 = arith.constant dense<0.000000e+00> : vector<2x128xf32>
    %25 = tpu.matmul %23, %24, %cst_9 {dimension_numbers = #tpu.dot_dimension_numbers<[1], [0], [0], [1], [0, 0, 1, 1], [], []>} : vector<2x128xf32>, vector<128x128xf32>, vector<2x128xf32> -> vector<2x128xf32>
    %cst_10 = arith.constant 3.906250e-03 : f32
    %26 = vector.broadcast %cst_10 : f32 to vector<2x128xf32>
    %27 = arith.mulf %25, %26 : vector<2x128xf32>
    %28 = vector.extract_strided_slice %27 {offsets = [0, 0], sizes = [1, 128], strides = [1, 1]} : vector<2x128xf32> to vector<1x128xf32>
    %29 = vector.extract_strided_slice %27 {offsets = [1, 0], sizes = [1, 128], strides = [1, 1]} : vector<2x128xf32> to vector<1x128xf32>
    %30 = arith.mulf %28, %28 : vector<1x128xf32>
    %31 = arith.subf %29, %30 : vector<1x128xf32>
    %cst_11 = arith.constant 9.99999974E-6 : f32
    %32 = vector.broadcast %cst_11 : f32 to vector<1x128xf32>
    %33 = arith.addf %31, %32 : vector<1x128xf32>
    %34 = math.rsqrt %33 : vector<1x128xf32>
    %35 = arith.mulf %34, %4 : vector<1x128xf32>
    %36 = arith.mulf %28, %35 : vector<1x128xf32>
    %37 = arith.subf %5, %36 : vector<1x128xf32>
    %38 = vector.broadcast %35 : vector<1x128xf32> to vector<16x128xf32>
    %39 = arith.mulf %17, %38 : vector<16x128xf32>
    %40 = vector.broadcast %37 : vector<1x128xf32> to vector<16x128xf32>
    %41 = arith.addf %39, %40 : vector<16x128xf32>
    %cst_12 = arith.constant 0.000000e+00 : f32
    %42 = vector.broadcast %cst_12 : f32 to vector<16x128xf32>
    %43 = arith.maximumf %41, %42 : vector<16x128xf32>
    %44 = vector.extract_strided_slice %43 {offsets = [1, 0], sizes = [1, 128], strides = [1, 1]} : vector<16x128xf32> to vector<1x128xf32>
    %45 = vector.extract_strided_slice %43 {offsets = [14, 0], sizes = [1, 128], strides = [1, 1]} : vector<16x128xf32> to vector<1x128xf32>
    %46 = tpu.concatenate %44, %43, %45 in 0 : vector<1x128xf32>, vector<16x128xf32>, vector<1x128xf32> -> vector<18x128xf32>
    %47 = vector.extract_strided_slice %46 {offsets = [0, 0], sizes = [16, 128], strides = [1, 1]} : vector<18x128xf32> to vector<16x128xf32>
    %48 = vector.extract_strided_slice %46 {offsets = [1, 0], sizes = [16, 128], strides = [1, 1]} : vector<18x128xf32> to vector<16x128xf32>
    %49 = vector.extract_strided_slice %46 {offsets = [2, 0], sizes = [16, 128], strides = [1, 1]} : vector<18x128xf32> to vector<16x128xf32>
    %50 = tpu.concatenate %47, %48, %49 in 1 : vector<16x128xf32>, vector<16x128xf32>, vector<16x128xf32> -> vector<16x384xf32>
    %c768 = arith.constant 768 : index
    %c0_13 = arith.constant 0 : index
    %51 = vector.load %arg2[%c768, %c0_13] : memref<1536x128xf32, #tpu.memory_space<vmem>>, vector<384x128xf32>
    %cst_14 = arith.constant dense<0.000000e+00> : vector<16x128xf32>
    %52 = tpu.matmul %50, %51, %cst_14 {dimension_numbers = #tpu.dot_dimension_numbers<[1], [0], [0], [1], [0, 0, 1, 1], [], []>} : vector<16x384xf32>, vector<384x128xf32>, vector<16x128xf32> -> vector<16x128xf32>
    %53 = vector.broadcast %6 : vector<1x128xf32> to vector<16x128xf32>
    %54 = arith.addf %52, %53 : vector<16x128xf32>
    %cst_15 = arith.constant 0.000000e+00 : f32
    %55 = vector.broadcast %cst_15 : f32 to vector<2x128xf32>
    %56 = tpu.concatenate %55, %1, %55 in 0 : vector<2x128xf32>, vector<16x128xf32>, vector<2x128xf32> -> vector<20x128xf32>
    %57 = vector.extract_strided_slice %56 {offsets = [0, 0], sizes = [16, 128], strides = [1, 1]} : vector<20x128xf32> to vector<16x128xf32>
    %58 = vector.extract_strided_slice %56 {offsets = [2, 0], sizes = [16, 128], strides = [1, 1]} : vector<20x128xf32> to vector<16x128xf32>
    %59 = vector.extract_strided_slice %56 {offsets = [4, 0], sizes = [16, 128], strides = [1, 1]} : vector<20x128xf32> to vector<16x128xf32>
    %60 = tpu.concatenate %57, %58, %59 in 1 : vector<16x128xf32>, vector<16x128xf32>, vector<16x128xf32> -> vector<16x384xf32>
    %c384 = arith.constant 384 : index
    %c0_16 = arith.constant 0 : index
    %61 = vector.load %arg2[%c384, %c0_16] : memref<1536x128xf32, #tpu.memory_space<vmem>>, vector<384x128xf32>
    %cst_17 = arith.constant dense<0.000000e+00> : vector<16x128xf32>
    %62 = tpu.matmul %60, %61, %cst_17 {dimension_numbers = #tpu.dot_dimension_numbers<[1], [0], [0], [1], [0, 0, 1, 1], [], []>} : vector<16x384xf32>, vector<384x128xf32>, vector<16x128xf32> -> vector<16x128xf32>
    %63 = vector.broadcast %7 : vector<1x128xf32> to vector<16x128xf32>
    %64 = arith.addf %62, %63 : vector<16x128xf32>
    %cst_18 = arith.constant dense<0.000000e+00> : vector<128xf32>
    %65 = vector.multi_reduction <add>, %64, %cst_18 [0] : vector<16x128xf32> to vector<128xf32>
    %66 = vector.shape_cast %65 : vector<128xf32> to vector<1x128xf32>
    %67 = arith.mulf %64, %64 : vector<16x128xf32>
    %cst_19 = arith.constant dense<0.000000e+00> : vector<128xf32>
    %68 = vector.multi_reduction <add>, %67, %cst_19 [0] : vector<16x128xf32> to vector<128xf32>
    %69 = vector.shape_cast %68 : vector<128xf32> to vector<1x128xf32>
    %70 = tpu.concatenate %66, %69 in 0 : vector<1x128xf32>, vector<1x128xf32> -> vector<2x128xf32>
    %c256_20 = arith.constant 256 : index
    %c0_21 = arith.constant 0 : index
    %71 = vector.load %arg2[%c256_20, %c0_21] : memref<1536x128xf32, #tpu.memory_space<vmem>>, vector<128x128xf32>
    %cst_22 = arith.constant dense<0.000000e+00> : vector<2x128xf32>
    %72 = tpu.matmul %70, %71, %cst_22 {dimension_numbers = #tpu.dot_dimension_numbers<[1], [0], [0], [1], [0, 0, 1, 1], [], []>} : vector<2x128xf32>, vector<128x128xf32>, vector<2x128xf32> -> vector<2x128xf32>
    %cst_23 = arith.constant 3.906250e-03 : f32
    %73 = vector.broadcast %cst_23 : f32 to vector<2x128xf32>
    %74 = arith.mulf %72, %73 : vector<2x128xf32>
    %75 = vector.extract_strided_slice %74 {offsets = [0, 0], sizes = [1, 128], strides = [1, 1]} : vector<2x128xf32> to vector<1x128xf32>
    %76 = vector.extract_strided_slice %74 {offsets = [1, 0], sizes = [1, 128], strides = [1, 1]} : vector<2x128xf32> to vector<1x128xf32>
    %77 = arith.mulf %75, %75 : vector<1x128xf32>
    %78 = arith.subf %76, %77 : vector<1x128xf32>
    %cst_24 = arith.constant 9.99999974E-6 : f32
    %79 = vector.broadcast %cst_24 : f32 to vector<1x128xf32>
    %80 = arith.addf %78, %79 : vector<1x128xf32>
    %81 = math.rsqrt %80 : vector<1x128xf32>
    %82 = arith.mulf %81, %8 : vector<1x128xf32>
    %83 = arith.mulf %75, %82 : vector<1x128xf32>
    %84 = arith.subf %9, %83 : vector<1x128xf32>
    %85 = vector.broadcast %82 : vector<1x128xf32> to vector<16x128xf32>
    %86 = arith.mulf %64, %85 : vector<16x128xf32>
    %87 = vector.broadcast %84 : vector<1x128xf32> to vector<16x128xf32>
    %88 = arith.addf %86, %87 : vector<16x128xf32>
    %cst_25 = arith.constant 0.000000e+00 : f32
    %89 = vector.broadcast %cst_25 : f32 to vector<16x128xf32>
    %90 = arith.maximumf %88, %89 : vector<16x128xf32>
    %91 = vector.extract_strided_slice %90 {offsets = [1, 0], sizes = [1, 128], strides = [1, 1]} : vector<16x128xf32> to vector<1x128xf32>
    %92 = vector.extract_strided_slice %90 {offsets = [14, 0], sizes = [1, 128], strides = [1, 1]} : vector<16x128xf32> to vector<1x128xf32>
    %93 = tpu.concatenate %91, %90, %92 in 0 : vector<1x128xf32>, vector<16x128xf32>, vector<1x128xf32> -> vector<18x128xf32>
    %94 = vector.extract_strided_slice %93 {offsets = [0, 0], sizes = [16, 128], strides = [1, 1]} : vector<18x128xf32> to vector<16x128xf32>
    %95 = vector.extract_strided_slice %93 {offsets = [1, 0], sizes = [16, 128], strides = [1, 1]} : vector<18x128xf32> to vector<16x128xf32>
    %96 = vector.extract_strided_slice %93 {offsets = [2, 0], sizes = [16, 128], strides = [1, 1]} : vector<18x128xf32> to vector<16x128xf32>
    %97 = tpu.concatenate %94, %95, %96 in 1 : vector<16x128xf32>, vector<16x128xf32>, vector<16x128xf32> -> vector<16x384xf32>
    %c1152 = arith.constant 1152 : index
    %c0_26 = arith.constant 0 : index
    %98 = vector.load %arg2[%c1152, %c0_26] : memref<1536x128xf32, #tpu.memory_space<vmem>>, vector<384x128xf32>
    %cst_27 = arith.constant dense<0.000000e+00> : vector<16x128xf32>
    %99 = tpu.matmul %97, %98, %cst_27 {dimension_numbers = #tpu.dot_dimension_numbers<[1], [0], [0], [1], [0, 0, 1, 1], [], []>} : vector<16x384xf32>, vector<384x128xf32>, vector<16x128xf32> -> vector<16x128xf32>
    %100 = vector.broadcast %10 : vector<1x128xf32> to vector<16x128xf32>
    %101 = arith.addf %99, %100 : vector<16x128xf32>
    %cst_28 = arith.constant 0.000000e+00 : f32
    %102 = vector.broadcast %cst_28 : f32 to vector<1x128xf32>
    %103 = tpu.concatenate %102, %54, %102 in 0 : vector<1x128xf32>, vector<16x128xf32>, vector<1x128xf32> -> vector<18x128xf32>
    %104 = vector.extract_strided_slice %103 {offsets = [0, 0], sizes = [16, 128], strides = [1, 1]} : vector<18x128xf32> to vector<16x128xf32>
    %105 = vector.extract_strided_slice %103 {offsets = [1, 0], sizes = [16, 128], strides = [1, 1]} : vector<18x128xf32> to vector<16x128xf32>
    %106 = vector.extract_strided_slice %103 {offsets = [2, 0], sizes = [16, 128], strides = [1, 1]} : vector<18x128xf32> to vector<16x128xf32>
    %107 = tpu.concatenate %104, %105, %106 in 1 : vector<16x128xf32>, vector<16x128xf32>, vector<16x128xf32> -> vector<16x384xf32>
    %c0_29 = arith.constant 0 : index
    %c0_30 = arith.constant 0 : index
    %108 = vector.load %arg3[%c0_29, %c0_30] : memref<768x256xf32, #tpu.memory_space<vmem>>, vector<384x256xf32>
    %cst_31 = arith.constant dense<0.000000e+00> : vector<16x256xf32>
    %109 = tpu.matmul %107, %108, %cst_31 {dimension_numbers = #tpu.dot_dimension_numbers<[1], [0], [0], [1], [0, 0, 1, 1], [], []>} : vector<16x384xf32>, vector<384x256xf32>, vector<16x256xf32> -> vector<16x256xf32>
    %cst_32 = arith.constant 0.000000e+00 : f32
    %110 = vector.broadcast %cst_32 : f32 to vector<1x128xf32>
    %111 = tpu.concatenate %110, %101, %110 in 0 : vector<1x128xf32>, vector<16x128xf32>, vector<1x128xf32> -> vector<18x128xf32>
    %112 = vector.extract_strided_slice %111 {offsets = [0, 0], sizes = [16, 128], strides = [1, 1]} : vector<18x128xf32> to vector<16x128xf32>
    %113 = vector.extract_strided_slice %111 {offsets = [1, 0], sizes = [16, 128], strides = [1, 1]} : vector<18x128xf32> to vector<16x128xf32>
    %114 = vector.extract_strided_slice %111 {offsets = [2, 0], sizes = [16, 128], strides = [1, 1]} : vector<18x128xf32> to vector<16x128xf32>
    %115 = tpu.concatenate %112, %113, %114 in 1 : vector<16x128xf32>, vector<16x128xf32>, vector<16x128xf32> -> vector<16x384xf32>
    %c384_33 = arith.constant 384 : index
    %c0_34 = arith.constant 0 : index
    %116 = vector.load %arg3[%c384_33, %c0_34] : memref<768x256xf32, #tpu.memory_space<vmem>>, vector<384x256xf32>
    %cst_35 = arith.constant dense<0.000000e+00> : vector<16x256xf32>
    %117 = tpu.matmul %115, %116, %cst_35 {dimension_numbers = #tpu.dot_dimension_numbers<[1], [0], [0], [1], [0, 0, 1, 1], [], []>} : vector<16x384xf32>, vector<384x256xf32>, vector<16x256xf32> -> vector<16x256xf32>
    %118 = arith.addf %109, %117 : vector<16x256xf32>
    %119 = tpu.concatenate %12, %13 in 1 : vector<1x128xf32>, vector<1x128xf32> -> vector<1x256xf32>
    %120 = vector.broadcast %119 : vector<1x256xf32> to vector<16x256xf32>
    %121 = arith.addf %118, %120 : vector<16x256xf32>
    %cst_36 = arith.constant 0.000000e+00 : f32
    %122 = vector.broadcast %cst_36 : f32 to vector<16x256xf32>
    %123 = arith.subf %122, %121 : vector<16x256xf32>
    %124 = math.exp %123 : vector<16x256xf32>
    %cst_37 = arith.constant 1.000000e+00 : f32
    %125 = vector.broadcast %cst_37 : f32 to vector<16x256xf32>
    %126 = arith.addf %125, %124 : vector<16x256xf32>
    %cst_38 = arith.constant 1.000000e+00 : f32
    %127 = vector.broadcast %cst_38 : f32 to vector<16x256xf32>
    %128 = arith.divf %127, %126 : vector<16x256xf32>
    %129 = vector.extract_strided_slice %128 {offsets = [0, 0], sizes = [16, 128], strides = [1, 1]} : vector<16x256xf32> to vector<16x128xf32>
    %130 = arith.mulf %54, %129 : vector<16x128xf32>
    %131 = vector.extract_strided_slice %128 {offsets = [0, 128], sizes = [16, 128], strides = [1, 1]} : vector<16x256xf32> to vector<16x128xf32>
    %132 = arith.mulf %101, %131 : vector<16x128xf32>
    %133 = arith.addf %130, %132 : vector<16x128xf32>
    %c128 = arith.constant 128 : index
    %c0_39 = arith.constant 0 : index
    %134 = vector.load %arg2[%c128, %c0_39] : memref<1536x128xf32, #tpu.memory_space<vmem>>, vector<128x128xf32>
    %cst_40 = arith.constant dense<0.000000e+00> : vector<16x128xf32>
    %135 = tpu.matmul %133, %134, %cst_40 {dimension_numbers = #tpu.dot_dimension_numbers<[1], [0], [0], [1], [0, 0, 1, 1], [], []>} : vector<16x128xf32>, vector<128x128xf32>, vector<16x128xf32> -> vector<16x128xf32>
    %136 = vector.broadcast %11 : vector<1x128xf32> to vector<16x128xf32>
    %137 = arith.addf %135, %136 : vector<16x128xf32>
    %c0_41 = arith.constant 0 : index
    %c0_42 = arith.constant 0 : index
    %c0_43 = arith.constant 0 : index
    %138 = vector.load %arg5[%c0_41, %c0_42, %c0_43] : memref<1x16x128xf32, #tpu.memory_space<vmem>>, vector<1x16x128xf32>
    %139 = vector.shape_cast %138 : vector<1x16x128xf32> to vector<16x128xf32>
    %140 = vector.shape_cast %137 : vector<16x128xf32> to vector<1x16x128xf32>
    tpu.vector_store %arg5[%c0_41, %c0_42, %c0_43], %140 {strides = array<i32>} : memref<1x16x128xf32, #tpu.memory_space<vmem>>, vector<1x16x128xf32>,
    return
  }
  func.func @transform_0(%arg0: i32) -> (i32, i32, i32) {
    %c0_i32 = arith.constant 0 : i32
    %c0_i32_0 = arith.constant 0 : i32
    %c0_i32_1 = arith.constant 0 : i32
    return %arg0, %c0_i32, %c0_i32_0 : i32, i32, i32
  }
  func.func @transform_1(%arg0: i32) -> (i32, i32) {
    %c0_i32 = arith.constant 0 : i32
    %c0_i32_0 = arith.constant 0 : i32
    %c0_i32_1 = arith.constant 0 : i32
    return %c0_i32, %c0_i32_0 : i32, i32
  }
  func.func @transform_2(%arg0: i32) -> (i32, i32) {
    %c0_i32 = arith.constant 0 : i32
    %c0_i32_0 = arith.constant 0 : i32
    %c0_i32_1 = arith.constant 0 : i32
    return %c0_i32, %c0_i32_0 : i32, i32
  }
  func.func @transform_3(%arg0: i32) -> (i32, i32) {
    %c0_i32 = arith.constant 0 : i32
    %c0_i32_0 = arith.constant 0 : i32
    %c0_i32_1 = arith.constant 0 : i32
    return %c0_i32, %c0_i32_0 : i32, i32
  }
  func.func @transform_4(%arg0: i32) -> (i32, i32, i32) {
    %c0_i32 = arith.constant 0 : i32
    %c0_i32_0 = arith.constant 0 : i32
    %c0_i32_1 = arith.constant 0 : i32
    return %arg0, %c0_i32, %c0_i32_0 : i32, i32, i32
  }
}

</mosaic_0001>

<bundles_post_ra>
// kernel: conv_layer_pallas.1
= control target key start
LH: loop header
LB: loop body
LE: loop exit
PB: predicated region body
PF: predicated region fallthrough
CT: control target
= control target key end

     0   :  { %9 = vsyncpa [#allocation3], 0  ;;  %s3565_s0 = inlined_call_operand.vmem [shape: f32[2,16,128], index: 0, kind: input, shape index: {}]   ;;  %s3566_s1 = inlined_call_operand.hbm [shape: f32[1536,128], index: 1, kind: input, shape index: {}]   ;;  %s3567_s2 = inlined_call_operand.hbm [shape: f32[768,256], index: 2, kind: input, shape index: {}]   ;;  %s3568_s3 = inlined_call_operand.vmem [shape: f32[11,128], index: 3, kind: input, shape index: {}]   ;;  %s3569_s4 = inlined_call_operand.vmem [shape: f32[2,16,128], index: 4, kind: output, shape index: {}]  }
   0x1   :  { %10 = vsyncpa [#allocation5], 0  ;;  %s3227_s15 = smov 0  }
   0x2 LB: > { %s3193_s16 = smov [#allocation2]   ;;  %s3233_s18 = sadd.s32 4294967295, %s3191_s15   ;;  %s3191_s15 = sphi %s3227_s15, %s16_s15  }
   0x3   : > { %s148_s17 = sshll.u32 %s3193_s16, 4  ;;  %p2052_p0 = scmp.ge.s32.totalorder %s3191_s15, 1  ;;  %s149_s17 = int_to_ptr.vmem [resolvable:$true] %s148_s17 }
   0x4   : > { %p136_p1 = scmp.lt.s32.totalorder %s3191_s15, 3  ;;  %p3570_p3 = scmp.eq.s32.totalorder %s3233_s18, 0 }
   0x5   : > { %s3194_s20 = smov [#allocation4]   ;;  %s3121_s25 = scalar_lea.hbm %s3566_s1, 24576 }
   0x6   : > { %p3237_p2 = pnand %p2052_p0, %p136_p1  ;;  %s161_s21 = sshll.u32 %s3194_s20, 4  ;;  %s3250_s21 = int_to_ptr.vmem [resolvable:$true] %s161_s21 }
   0x7   : > { %p3122_p6 = scmp.ne.s32.totalorder %s3566_s1, %s3121_s25  ;;  %p3128_p10 = scmp.lt.u32.totalorder %s3121_s25, %s3566_s1 }
   0x8   : > { %s3572_s19 = scalar_select %p3237_p2, 1, 0 }
   0x9   : > { %p3072_p4 = pneg %p3237_p2 }
   0xb   : > { %p3246_p5 = pnand %p3570_p3, %p3072_p4 }
   0xd   : > { %p3123_p7 = pneg %p3246_p5 }
   0xf   : > { %p3124_p8 = pnand %p3123_p7, %p3122_p6 }
  0x11   : > { %p3125_p9 = pneg %p3124_p8 }
  0x13   : > { %p3130_p11 = pnand %p3128_p10, %p3125_p9 }
  0x15   : > { %3133 = shalt.err (!%p3130_p11)
}
  0x16   : > { %s3134_s30 = scalar_lea.vmem %s149_s17, 24576  ;;  %p3142_p1 = scmp.lt.s32.totalorder %s149_s17, %s149_s17 }
  0x17   : > { %p3135_p12 = scmp.ne.s32.totalorder %s149_s17, %s3134_s30  ;;  %p3143_p4 = scmp.lt.s32.totalorder %s3134_s30, %s3134_s30 }
  0x19   : > { %p3137_p13 = pnand %p3135_p12, %p3123_p7  ;;  %p3144_p3 = por %p3143_p4, %p3142_p1 }
  0x1b   : > { %p3138_p0 = pneg %p3137_p13 }
  0x1d   : > { %p3145_p2 = pnand %p3144_p3, %p3138_p0 }
  0x1f   : > { %3148 = shalt.err (!%p3145_p2)
}
  0x20   : > { %s3195_s5 = smov 128   ;;  %s3196_s6 = smov 8  }
  0x21   : > { %3075 = dma.hbm_to_vmem [thread:$0]  (!%p3246_p5), %s3566_s1, 24576, %s149_s17, [#allocation3], %s3195_s5, %s3195_s5, %s3196_s6  }
  0x22   : > { %s3149_s11 = scalar_lea.hbm %s3567_s2, 24576 }
  0x23   : > { %p3150_p6 = scmp.ne.s32.totalorder %s3567_s2, %s3149_s11  ;;  %p3156_p8 = scmp.lt.u32.totalorder %s3149_s11, %s3567_s2 }
  0x25   : > { %p3152_p2 = pnand %p3150_p6, %p3123_p7 }
  0x27   : > { %p3153_p3 = pneg %p3152_p2 }
  0x29   : > { %p3158_p9 = pnand %p3156_p8, %p3153_p3 }
  0x2b   : > { %3161 = shalt.err (!%p3158_p9)
}
  0x2c   : > { %s3162_s17 = scalar_lea.vmem %s3250_s21, 24576  ;;  %p3170_p13 = scmp.lt.s32.totalorder %s3250_s21, %s3250_s21 }
  0x2d   : > { %p3163_p10 = scmp.ne.s32.totalorder %s3250_s21, %s3162_s17  ;;  %p3171_p0 = scmp.lt.s32.totalorder %s3162_s17, %s3162_s17 }
  0x2f   : > { %p3165_p11 = pnand %p3163_p10, %p3123_p7  ;;  %p3172_p1 = por %p3171_p0, %p3170_p13 }
  0x31   : > { %p3166_p12 = pneg %p3165_p11 }
  0x33   : > { %p3173_p4 = pnand %p3172_p1, %p3166_p12 }
  0x35   : > { %3176 = shalt.err (!%p3173_p4)
}
  0x36   : > { %s3197_s20 = smov 256   ;;  %s3198_s23 = smov 16  }
  0x37   : > { %3078 = dma.hbm_to_vmem [thread:$0]  (!%p3246_p5), %s3567_s2, 24576, %s3250_s21, [#allocation5], %s3197_s20, %s3197_s20, %s3198_s23  }
  0x38   : > { %p3574_p6 = scmp.ne.s32.totalorder %s3572_s19, 0 }
  0x39   : > { %p3575_p7 = scmp.eq.s32.totalorder (!%p3574_p6), %s3233_s18, 0 }
  0x3a   : > { %188 = sbr.rel (%p3574_p6) target bundleno = 1915 (0x77b), region = 36 }
  0x41   : > { %3182 = dma.done.wait (%p3575_p7), [#allocation3], 24576   ;;  %p3576_p2 = pmov %p3575_p7 }
  0x43   : > { %3184 = vsyncadd (%p3576_p2), [#allocation3], 4294942720  ;;  %p3577_p3 = pmov %p3576_p2 }
  0x44   : > { %p3578_p8 = pmov %p3576_p2 }
  0x45   : > { %3186 = dma.done.wait (%p3577_p3), [#allocation5], 24576  }
  0x46   : > { %3188 = vsyncadd (%p3578_p8), [#allocation5], 4294942720  ;;  %p218_p9 = scmp.lt.s32.totalorder %s3233_s18, 1  ;;  %v3199_v0 = vmov 0.0|0.0   ;;  %v232_v1 = vld [vmem:[#allocation2] sm:$0xff]  ;;  %v233_v2 = vld [vmem:[#allocation2 + $0x8] sm:$0xff]  ;;  %v248_v55 = vlaneseq }
  0x47   : > { %2588 = vmatprep.subr.bf16.mxu1 %v3199_v0  ;;  %v234_v3 = vld [vmem:[#allocation2 + $0x10] sm:$0xff]  ;;  %v2556_v4 = vpack.c.bf16 %v233_v2, %v232_v1  ;;  %v235_v5 = vld [vmem:[#allocation2 + $0x18] sm:$0xff]  ;;  %v236_v7 = vld [vmem:[#allocation2 + $0x20] sm:$0xff]  ;;  %vm698_vm0 = vcmask 1041408   ;;  %vm3200_vm1 = vmmov 0   ;;  %v3201_v53 = vmov 0.0  }
  0x48   : > { %s3582_s18 = smov (!%p218_p9, %s3233_s18), 1  ;;  %v2560_v6 = vpack.c.bf16 %v235_v5, %v234_v3  ;;  %v237_v8 = vld [vmem:[#allocation2 + $0x28] sm:$0xff]  ;;  %v238_v9 = vld [vmem:[#allocation2 + $0x30] sm:$0xff]  ;;  %v239_v11 = vld [vmem:[#allocation2 + $0x38] sm:$0xff]  ;;  %2378 = vmatprep.mubr.msk.f32.mxu1 %vm3200_vm1, %v3201_v53  ;;  %v3365_v56 = vshrl.u32 %v248_v55, 7  ;;  %vm343_vm2 = vcmask 1040384  }
  0x49   : > { %s2071_s19 = sshll.u32 %s3582_s18, 4  ;;  %2557 = vmatprep.subr.bf16.mxu0 %v2556_v4  ;;  %v2564_v10 = vpack.c.bf16 %v237_v8, %v236_v7  ;;  %v345_v16 = vld [vmem:[#allocation2 + $0x100] sm:$0xff]  ;;  %v346_v17 = vld [vmem:[#allocation2 + $0x108] sm:$0xff]  ;;  %v347_v18 = vld [vmem:[#allocation2 + $0x110] sm:$0xff]  ;;  %v2568_v22 = vpack.c.bf16 %v239_v11, %v238_v9  ;;  %vm486_vm3 = vcmask 1045504   ;;  %vm716_vm4 = vcmask 1043456  }
  0x4a   : > { %s222_s26 = scalar_lea.vmem %s3565_s0, %s2071_s19  ;;  %2559 = vmatpush3.bf16.msra.mxu0 %v2556_v4  ;;  %v3325_v19 = vpack.c.bf16 %v346_v17, %v345_v16  ;;  %v348_v20 = vld [vmem:[#allocation2 + $0x118] sm:$0xff]  ;;  %v240_v23 = vld [vmem:[#allocation2 + $0x40] sm:$0xff]  ;;  %v241_v25 = vld [vmem:[#allocation2 + $0x48] sm:$0xff]  ;;  %v250_v57 = vsub.s32 0, %v3365_v56  ;;  %vm478_vm5 = vcmask 1046528   ;;  %s227_s9 = scalar_lea.vmem %s3569_s4, %s2071_s19 }
  0x4b   : > { %2561 = vmatprep.subr.bf16.mxu0 %v2560_v6  ;;  %v228_v12 = vld [vmem:[%s222_s26] sm:$0xff]  ;;  %v3320_v13 = vld [vmem:[%s222_s26 + $0x8] sm:$0xff]  ;;  %v3334_v24 = vpack.c.bf16 %v348_v20, %v347_v18  ;;  %v2572_v28 = vpack.c.bf16 %v241_v25, %v240_v23  ;;  %v242_v30 = vld [vmem:[#allocation2 + $0x50] sm:$0xff] }
  0x4c   : > { %2343 = vmatprep.mubr.f32.mxu0 %v228_v12  ;;  %v3322_v14 = vrot.slane %v228_v12, 6  ;;  %v700_v15 = vrot.slane %v3320_v13, 6  ;;  %2590 = vmatpush3.bf16.msra.mxu1 %v3325_v19  ;;  %v349_v26 = vld [vmem:[#allocation2 + $0x120] sm:$0xff]  ;;  %v350_v27 = vld [vmem:[#allocation2 + $0x128] sm:$0xff]  ;;  %v243_v31 = vld [vmem:[#allocation2 + $0x58] sm:$0xff] }
  0x4d   : > { %2591 = vmatprep.subr.bf16.mxu1 %v3199_v0  ;;  %v3338_v29 = vpack.c.bf16 %v350_v27, %v349_v26  ;;  %v2576_v32 = vpack.c.bf16 %v243_v31, %v242_v30  ;;  %v244_v33 = vld [vmem:[#allocation2 + $0x60] sm:$0xff]  ;;  %v245_v34 = vld [vmem:[#allocation2 + $0x68] sm:$0xff]  ;;  %v246_v36 = vld [vmem:[#allocation2 + $0x70] sm:$0xff] }
  0x4e   : > { %2563 = vmatpush3.bf16.msra.mxu0 %v2560_v6  ;;  %v3331_v21 = vsel %vm698_vm0, %v3322_v14, %v700_v15  ;;  %v2580_v35 = vpack.c.bf16 %v245_v34, %v244_v33  ;;  %v247_v37 = vld [vmem:[#allocation2 + $0x78] sm:$0xff]  ;;  %v351_v39 = vld [vmem:[#allocation2 + $0x130] sm:$0xff]  ;;  %v353_v42 = vld [vmem:[#allocation2 + $0x140] sm:$0xff] }
  0x4f   : > { %2565 = vmatprep.subr.bf16.mxu0 %v2564_v10  ;;  %v2584_v38 = vpack.c.bf16 %v247_v37, %v246_v36  ;;  %v352_v40 = vld [vmem:[#allocation2 + $0x138] sm:$0xff]  ;;  %v354_v43 = vld [vmem:[#allocation2 + $0x148] sm:$0xff]  ;;  %v355_v45 = vld [vmem:[#allocation2 + $0x150] sm:$0xff] }
  0x50   : > { %2593 = vmatpush3.bf16.msra.mxu1 %v3334_v24  ;;  %v3344_v41 = vpack.c.bf16 %v352_v40, %v351_v39  ;;  %v3348_v44 = vpack.c.bf16 %v354_v43, %v353_v42  ;;  %v356_v46 = vld [vmem:[#allocation2 + $0x158] sm:$0xff]  ;;  %v357_v48 = vld [vmem:[#allocation2 + $0x160] sm:$0xff]  ;;  %v358_v49 = vld [vmem:[#allocation2 + $0x168] sm:$0xff] }
  0x51   : > { %2594 = vmatprep.subr.bf16.mxu1 %v3199_v0  ;;  %v3352_v47 = vpack.c.bf16 %v356_v46, %v355_v45  ;;  %v3356_v50 = vpack.c.bf16 %v358_v49, %v357_v48  ;;  %v359_v51 = vld [vmem:[#allocation2 + $0x170] sm:$0xff]  ;;  %v360_v52 = vld [vmem:[#allocation2 + $0x178] sm:$0xff]  ;;  %v3371_v58 = vld [vmem:[%s3568_s3] sm:$0xff] }
  0x52   : > { %2567 = vmatpush3.bf16.msra.mxu0 %v2564_v10  ;;  %v3361_v54 = vpack.c.bf16 %v360_v52, %v359_v51  ;;  %v251_v59 = vrot.slane %v3371_v58, %v250_v57  ;;  %v510_v23 = vld [vmem:[#allocation2 + $0x380] sm:$0xff]  ;;  %v511_v25 = vld [vmem:[#allocation2 + $0x388] sm:$0xff]  ;;  %v512_v34 = vld [vmem:[#allocation2 + $0x390] sm:$0xff] }
  0x53   : > { %2569 = vmatprep.subr.bf16.mxu0 %v2568_v22  ;;  %v2612_v26 = vpack.c.bf16 %v511_v25, %v510_v23  ;;  %v494_v27 = vld [vmem:[#allocation2 + $0x300] sm:$0xff]  ;;  %v496_v37 = vld [vmem:[#allocation2 + $0x310] sm:$0xff]  ;;  %v529_v42 = vld [vmem:[#allocation2 + $0x418] sm:$0xff] }
  0x54   : > { %2596 = vmatpush3.bf16.msra.mxu1 %v3338_v29  ;;  %v526_v30 = vld [vmem:[#allocation2 + $0x400] sm:$0xff]  ;;  %v528_v39 = vld [vmem:[#allocation2 + $0x410] sm:$0xff]  ;;  %v515_v46 = vld [vmem:[#allocation2 + $0x3a8] sm:$0xff] }
  0x55   : > { %2597 = vmatprep.subr.bf16.mxu1 %v3199_v0  ;;  %v2648_v43 = vpack.c.bf16 %v529_v42, %v528_v39  ;;  %v514_v45 = vld [vmem:[#allocation2 + $0x3a0] sm:$0xff]  ;;  %v499_v51 = vld [vmem:[#allocation2 + $0x328] sm:$0xff]  ;;  %v520_v23 = vld [vmem:[#allocation2 + $0x3d0] sm:$0xff] }
  0x56   : > { %2571 = vmatpush3.bf16.msra.mxu0 %v2568_v22  ;;  %v2620_v48 = vpack.c.bf16 %v515_v46, %v514_v45  ;;  %v498_v49 = vld [vmem:[#allocation2 + $0x320] sm:$0xff]  ;;  %v521_v25 = vld [vmem:[#allocation2 + $0x3d8] sm:$0xff]  ;;  %v539_v42 = vld [vmem:[#allocation2 + $0x468] sm:$0xff] }
  0x57   : > { %2573 = vmatprep.subr.bf16.mxu0 %v2572_v28  ;;  %v530_v52 = vld [vmem:[#allocation2 + $0x420] sm:$0xff]  ;;  %v2622_v55 = vpack.c.bf16 %v499_v51, %v498_v49  ;;  %v524_v45 = vld [vmem:[#allocation2 + $0x3f0] sm:$0xff]  ;;  %v525_v46 = vld [vmem:[#allocation2 + $0x3f8] sm:$0xff] }
  0x58   : > { %2599 = vmatpush3.bf16.msra.mxu1 %v3344_v41  ;;  %v538_v39 = vld [vmem:[#allocation2 + $0x460] sm:$0xff]  ;;  %v2640_v49 = vpack.c.bf16 %v525_v46, %v524_v45  ;;  %v509_v51 = vld [vmem:[#allocation2 + $0x378] sm:$0xff]  ;;  %vm2063_vm6 = vmneg %vm698_vm0 }
  0x59   : > { %2600 = vmatprep.subr.bf16.mxu1 %v3199_v0  ;;  %vm3500_vm7 = vmneg %vm343_vm2 }
  0x5a   : > { %2575 = vmatpush3.bf16.msra.mxu0 %v2572_v28  ;;  %v495_v28 = vld [vmem:[#allocation2 + $0x308] sm:$0xff] }
  0x5b   : > { %2577 = vmatprep.subr.bf16.mxu0 %v2576_v32  ;;  %v2614_v31 = vpack.c.bf16 %v495_v28, %v494_v27  ;;  %v504_v27 = vld [vmem:[#allocation2 + $0x350] sm:$0xff]  ;;  %v505_v28 = vld [vmem:[#allocation2 + $0x358] sm:$0xff] }
  0x5c   : > { %2602 = vmatpush3.bf16.msra.mxu1 %v3348_v44 }
  0x5d   : > { %2603 = vmatprep.subr.bf16.mxu1 %v3199_v0 }
  0x5e   : > { %2579 = vmatpush3.bf16.msra.mxu0 %v2576_v32  ;;  %v527_v32 = vld [vmem:[#allocation2 + $0x408] sm:$0xff] }
  0x5f   : > { %2581 = vmatprep.subr.bf16.mxu0 %v2580_v35  ;;  %v2644_v33 = vpack.c.bf16 %v527_v32, %v526_v30  ;;  %v536_v30 = vld [vmem:[#allocation2 + $0x450] sm:$0xff]  ;;  %v537_v32 = vld [vmem:[#allocation2 + $0x458] sm:$0xff] }
  0x60   : > { %2605 = vmatpush3.bf16.msra.mxu1 %v3352_v47 }
  0x61   : > { %2606 = vmatprep.subr.bf16.mxu1 %v3199_v0 }
  0x62   : > { %2583 = vmatpush3.bf16.msra.mxu0 %v2580_v35  ;;  %v513_v35 = vld [vmem:[#allocation2 + $0x398] sm:$0xff] }
  0x63   : > { %2585 = vmatprep.subr.bf16.mxu0 %v2584_v38  ;;  %v2616_v36 = vpack.c.bf16 %v513_v35, %v512_v34  ;;  %v522_v34 = vld [vmem:[#allocation2 + $0x3e0] sm:$0xff]  ;;  %v523_v35 = vld [vmem:[#allocation2 + $0x3e8] sm:$0xff] }
  0x64   : > { %2608 = vmatpush3.bf16.msra.mxu1 %v3356_v50 }
  0x65   : > { %2609 = vmatprep.subr.bf16.mxu1 %v3199_v0 }
  0x66   : > { %2587 = vmatpush3.bf16.msra.mxu0 %v2584_v38  ;;  %v497_v38 = vld [vmem:[#allocation2 + $0x318] sm:$0xff] }
  0x67   : > { %2613 = vmatprep.subr.bf16.mxu0 %v2612_v26  ;;  %v2618_v40 = vpack.c.bf16 %v497_v38, %v496_v37  ;;  %v2632_v26 = vpack.c.bf16 %v521_v25, %v520_v23  ;;  %v506_v37 = vld [vmem:[#allocation2 + $0x360] sm:$0xff]  ;;  %v507_v38 = vld [vmem:[#allocation2 + $0x368] sm:$0xff] }
  0x68   : > { %2611 = vmatpush3.bf16.msra.mxu1 %v3361_v54 }
  0x69   : > { %2344 = vmatmul.mubr.f32.vlgmr.msra.gmra.mrb[0].mxu0 %v3320_v13  ;;  %2645 = vmatprep.subr.bf16.mxu1 %v2644_v33 }
  0x6a   : > { %2615 = vmatpush3.bf16.msra.mxu0 %v2614_v31  ;;  %v2634_v31 = vpack.c.bf16 %v505_v28, %v504_v27 }
  0x6b   : > { %2617 = vmatprep.subr.bf16.mxu0 %v2616_v36  ;;  %v2636_v36 = vpack.c.bf16 %v523_v35, %v522_v34 }
  0x6e   : > { %2619 = vmatpush3.bf16.msra.mxu0 %v2618_v40  ;;  %v2638_v40 = vpack.c.bf16 %v507_v38, %v506_v37  ;;  %v456_v37 = vsub.s32 2, %v3365_v56 }
  0x6f   : > { %2621 = vmatprep.subr.bf16.mxu0 %v2620_v48  ;;  %v508_v48 = vld [vmem:[#allocation2 + $0x370] sm:$0xff] }
  0x72   : > { %2623 = vmatpush3.bf16.msra.mxu0 %v2622_v55  ;;  %v541_v55 = vld [vmem:[#allocation2 + $0x478] sm:$0xff] }
 0x13c   : > { %v2345_v60 = vpop.f32.mrb[0].mxu0 }
 0x13d   : > { %v3376_v61 = vadd.f32 %v2345_v60, %v251_v59  ;;  %v318_v62 = vpop.f32.mrb[1].mxu0 }
 0x13e   : > { %v3378_v63 = vadd.f32 %v318_v62, %v251_v59  ;;  %v531_v59 = vld [vmem:[#allocation2 + $0x428] sm:$0xff]  ;;  %v516_v62 = vld [vmem:[#allocation2 + $0x3b0] sm:$0xff] }
 0x13f   : > { %v335_v1 = vmul.f32 %v3376_v61, %v3376_v61  ;;  %v2652_v60 = vpack.c.bf16 %v531_v59, %v530_v52  ;;  %v540_v52 = vld [vmem:[#allocation2 + $0x470] sm:$0xff]  ;;  %v2642_v59 = vpack.c.bf16 %v509_v51, %v508_v48 }
 0x140   : > { %v327_v2 = vadd.f32 %v3376_v61, %v3378_v63  ;;  %v334_v3 = vmul.f32 %v3378_v63, %v3378_v63 }
 0x142   : > { %v328_v4 = vrot.slane %v327_v2, 4  ;;  %v336_v5 = vadd.f32 %v335_v1, %v334_v3  ;;  %v517_v1 = vld [vmem:[#allocation2 + $0x3b8] sm:$0xff]  ;;  %v500_v3 = vld [vmem:[#allocation2 + $0x330] sm:$0xff] }
 0x144   : > { %v329_v6 = vadd.f32 %v328_v4, %v327_v2  ;;  %v337_v7 = vrot.slane %v336_v5, 4  ;;  %v2624_v2 = vpack.c.bf16 %v517_v1, %v516_v62  ;;  %v501_v4 = vld [vmem:[#allocation2 + $0x338] sm:$0xff]  ;;  %v740_v62 = vld [vmem:[#allocation2 + $0x200] sm:$0xff]  ;;  %v741_v1 = vld [vmem:[#allocation2 + $0x208] sm:$0xff] }
 0x146   : > { %v330_v8 = vrot.slane %v329_v6, 2  ;;  %v338_v9 = vadd.f32 %v337_v7, %v336_v5  ;;  %v532_v5 = vld [vmem:[#allocation2 + $0x430] sm:$0xff]  ;;  %v533_v7 = vld [vmem:[#allocation2 + $0x438] sm:$0xff]  ;;  %2625 = vmatprep.subr.bf16.mxu0 %v2624_v2  ;;  %v2676_v2 = vpack.c.bf16 %v741_v1, %v740_v62 }
 0x148   : > { %v331_v10 = vadd.f32 %v330_v8, %v329_v6  ;;  %v339_v11 = vrot.slane %v338_v9, 2  ;;  %v2626_v6 = vpack.c.bf16 %v501_v4, %v500_v3  ;;  %v2656_v8 = vpack.c.bf16 %v533_v7, %v532_v5  ;;  %v756_v3 = vld [vmem:[#allocation2 + $0x280] sm:$0xff]  ;;  %v757_v4 = vld [vmem:[#allocation2 + $0x288] sm:$0xff] }
 0x149   : > { %v3387_v5 = vpack.c.bf16 %v757_v4, %v756_v3  ;;  %v706_v7 = vsel %vm698_vm0, %v700_v15, 0.0 }
 0x14a   : > { %v332_v12 = vrot.slane %v331_v10, 1  ;;  %v340_v16 = vadd.f32 %v339_v11, %v338_v9  ;;  %2627 = vmatpush3.bf16.msra.mxu0 %v2626_v6  ;;  %v518_v9 = vld [vmem:[#allocation2 + $0x3c0] sm:$0xff]  ;;  %v705_v6 = vsel %vm698_vm0, 0.0, %v3322_v14 }
 0x14c   : > { %v341_v17 = vrot.slane %v340_v16, 1  ;;  %v333_v18 = vadd.f32 %v332_v12, %v331_v10  ;;  %v519_v10 = vld [vmem:[#allocation2 + $0x3c8] sm:$0xff]  ;;  %v502_v12 = vld [vmem:[#allocation2 + $0x340] sm:$0xff] }
 0x14d   : > { %v2628_v11 = vpack.c.bf16 %v519_v10, %v518_v9  ;;  %v709_v9 = vrot.slane %v705_v6, 2  ;;  %v710_v10 = vrot.slane %v3331_v21, 2 }
 0x14e   : > { %v342_v20 = vadd.f32 %v341_v17, %v340_v16  ;;  %v503_v16 = vld [vmem:[#allocation2 + $0x348] sm:$0xff]  ;;  %v534_v17 = vld [vmem:[#allocation2 + $0x440] sm:$0xff] }
 0x14f   : > { %2629 = vmatprep.subr.bf16.mxu0 %v2628_v11  ;;  %v3397_v11 = vsel %vm486_vm3, %v709_v9, %v710_v10  ;;  %v759_v9 = vld [vmem:[#allocation2 + $0x298] sm:$0xff] }
 0x150   : > { %v344_v22 = vsel %vm343_vm2, %v333_v18, %v342_v20  ;;  %v2630_v18 = vpack.c.bf16 %v503_v16, %v502_v12  ;;  %v535_v20 = vld [vmem:[#allocation2 + $0x448] sm:$0xff]  ;;  %v720_v12 = vrot.slane %v706_v7, 4 }
 0x151   : > { %2379 = vmatmul.mubr.f32.vlgmr.msra.gmra.mrb[0].mxu1 %v344_v22  ;;  %v2660_v22 = vpack.c.bf16 %v535_v20, %v534_v17  ;;  %v717_v17 = vrot.slane %v705_v6, 4 }
 0x152   : > { %2647 = vmatpush3.bf16.msra.mxu1 %v2644_v33  ;;  %2631 = vmatpush3.bf16.msra.mxu0 %v2630_v18  ;;  %v2664_v33 = vpack.c.bf16 %v537_v32, %v536_v30  ;;  %v718_v18 = vrot.slane %v3331_v21, 4 }
 0x153   : > { %2649 = vmatprep.subr.bf16.mxu1 %v2648_v43  ;;  %2633 = vmatprep.subr.bf16.mxu0 %v2632_v26 }
 0x154   : > { %v3403_v20 = vsel %vm716_vm4, %v717_v17, %v718_v18  ;;  %v3405_v13 = vsel %vm716_vm4, %v718_v18, %v720_v12 }
 0x156   : > { %2651 = vmatpush3.bf16.msra.mxu1 %v2648_v43  ;;  %2635 = vmatpush3.bf16.msra.mxu0 %v2634_v31  ;;  %v2668_v43 = vpack.c.bf16 %v539_v42, %v538_v39 }
 0x157   : > { %2653 = vmatprep.subr.bf16.mxu1 %v2652_v60  ;;  %2637 = vmatprep.subr.bf16.mxu0 %v2636_v36 }
 0x15a   : > { %2655 = vmatpush3.bf16.msra.mxu1 %v2652_v60  ;;  %2639 = vmatpush3.bf16.msra.mxu0 %v2638_v40  ;;  %v2672_v60 = vpack.c.bf16 %v541_v55, %v540_v52 }
 0x15b   : > { %2657 = vmatprep.subr.bf16.mxu1 %v2656_v8  ;;  %2641 = vmatprep.subr.bf16.mxu0 %v2640_v49 }
 0x15e   : > { %2659 = vmatpush3.bf16.msra.mxu1 %v2656_v8  ;;  %2643 = vmatpush3.bf16.msra.mxu0 %v2642_v59  ;;  %v712_v8 = vrot.slane %v706_v7, 2  ;;  %v724_v59 = vld [vmem:[#allocation2 + $0x180] sm:$0xff] }
 0x15f   : > { %2661 = vmatprep.subr.bf16.mxu1 %v2660_v22  ;;  %2677 = vmatprep.subr.bf16.mxu0 %v2676_v2  ;;  %v742_v2 = vld [vmem:[#allocation2 + $0x210] sm:$0xff] }
 0x160   : > { %v3400_v16 = vsel %vm486_vm3, %v710_v10, %v712_v8  ;;  %v758_v8 = vld [vmem:[#allocation2 + $0x290] sm:$0xff] }
 0x162   : > { %2663 = vmatpush3.bf16.msra.mxu1 %v2660_v22 }
 0x163   : > { %2665 = vmatprep.subr.bf16.mxu1 %v2664_v33 }
 0x166   : > { %2667 = vmatpush3.bf16.msra.mxu1 %v2664_v33  ;;  %v3409_v33 = vsub.s32 1, %v3365_v56 }
 0x167   : > { %2669 = vmatprep.subr.bf16.mxu1 %v2668_v43 }
 0x16a   : > { %2671 = vmatpush3.bf16.msra.mxu1 %v2668_v43 }
 0x16b   : > { %2673 = vmatprep.subr.bf16.mxu1 %v2672_v60 }
 0x16e   : > { %2675 = vmatpush3.bf16.msra.mxu1 %v2672_v60  ;;  %v725_v60 = vld [vmem:[#allocation2 + $0x188] sm:$0xff] }
 0x16f   : > { %2709 = vmatprep.subr.bf16.mxu1 %v3387_v5  ;;  %v2678_v12 = vpack.c.bf16 %v725_v60, %v724_v59  ;;  %v764_v59 = vld [vmem:[#allocation2 + $0x2c0] sm:$0xff]  ;;  %v765_v60 = vld [vmem:[#allocation2 + $0x2c8] sm:$0xff] }
 0x224   : > { %v427_v15 = vpop.f32.mrb[0].mxu1 }
 0x225   : > { %v431_v22 = vmul.f32 0.00390625, %v427_v15  ;;  %v2380_v23 = vpop.f32.mrb[1].mxu1 }
 0x226   : > { %v726_v23 = vld [vmem:[#allocation2 + $0x190] sm:$0xff] }
 0x227   : > { %v432_v25 = vmul.f32 %v431_v22, %v431_v22 }
 0x229   : > { %v434_v26 = vrot.slane %v432_v25, 7  ;;  %v727_v25 = vld [vmem:[#allocation2 + $0x198] sm:$0xff] }
 0x22b   : > { %v436_v27 = vsub.f32 %v431_v22, %v434_v26 }
 0x22d   : > { %v437_v28 = vadd.f32 1e-05, %v436_v27  ;;  %v744_v27 = vld [vmem:[#allocation2 + $0x220] sm:$0xff] }
 0x22f   : > { %3100 = vrsqrt.f32 %v437_v28  ;;  %v745_v28 = vld [vmem:[#allocation2 + $0x228] sm:$0xff] }
 0x239   : > { %v3101_v30 = vpop.eup %3100 }
 0x23a   : > { %v439_v31 = vmul.f32 %v3101_v30, %v3371_v58  ;;  %v2712_v30 = vpack.c.bf16 %v759_v9, %v758_v8  ;;  %v734_v8 = vld [vmem:[#allocation2 + $0x1d0] sm:$0xff]  ;;  %v735_v9 = vld [vmem:[#allocation2 + $0x1d8] sm:$0xff] }
 0x23c   : > { %v441_v32 = vrot.slane %v439_v31, 1  ;;  %v451_v36 = vrot.slane %v439_v31, %v3409_v33 }
 0x23e   : > { %v443_v34 = vmul.f32 %v441_v32, %v431_v22  ;;  %v452_v39 = vmul.f32 %v451_v36, %v3378_v63  ;;  %v453_v40 = vmul.f32 %v451_v36, %v3376_v61  ;;  %v743_v61 = vld [vmem:[#allocation2 + $0x218] sm:$0xff]  ;;  %v760_v32 = vld [vmem:[#allocation2 + $0x2a0] sm:$0xff]  ;;  %v2684_v36 = vpack.c.bf16 %v745_v28, %v744_v27  ;;  %v754_v27 = vld [vmem:[#allocation2 + $0x270] sm:$0xff] }
 0x23f   : > { %v2680_v22 = vpack.c.bf16 %v743_v61, %v742_v2  ;;  %v751_v2 = vld [vmem:[#allocation2 + $0x258] sm:$0xff]  ;;  %v2724_v61 = vpack.c.bf16 %v765_v60, %v764_v59 }
 0x240   : > { %v445_v35 = vrot.slane %v443_v34, 6  ;;  %v761_v34 = vld [vmem:[#allocation2 + $0x2a8] sm:$0xff]  ;;  %v755_v28 = vld [vmem:[#allocation2 + $0x278] sm:$0xff] }
 0x242   : > { %v447_v38 = vsub.f32 %v3371_v58, %v445_v35  ;;  %v2682_v35 = vpack.c.bf16 %v727_v25, %v726_v23  ;;  %v736_v25 = vld [vmem:[#allocation2 + $0x1e0] sm:$0xff] }
 0x244   : > { %v457_v42 = vrot.slane %v447_v38, %v456_v37  ;;  %v728_v37 = vld [vmem:[#allocation2 + $0x1a0] sm:$0xff]  ;;  %v729_v38 = vld [vmem:[#allocation2 + $0x1a8] sm:$0xff] }
 0x246   : > { %v458_v43 = vadd.f32 %v457_v42, %v452_v39  ;;  %v459_v45 = vadd.f32 %v457_v42, %v453_v40  ;;  %v746_v39 = vld [vmem:[#allocation2 + $0x230] sm:$0xff]  ;;  %v747_v40 = vld [vmem:[#allocation2 + $0x238] sm:$0xff]  ;;  %v2716_v42 = vpack.c.bf16 %v761_v34, %v760_v32 }
 0x247   : > { %v771_v32 = vld [vmem:[#allocation2 + $0x2f8] sm:$0xff] }
 0x248   : > { %v460_v46 = vmax.f32 %v458_v43, 0.0  ;;  %v461_v48 = vmax.f32 %v459_v45, 0.0  ;;  %v762_v43 = vld [vmem:[#allocation2 + $0x2b0] sm:$0xff]  ;;  %v763_v45 = vld [vmem:[#allocation2 + $0x2b8] sm:$0xff] }
 0x24a   : > { %v463_v49 = vrot.slane %v460_v46, 1  ;;  %v466_v51 = vrot.slane %v460_v46, 7  ;;  %v467_v52 = vrot.slane %v461_v48, 7  ;;  %v472_v55 = vrot.slane %v461_v48, 5 }
 0x24b   : > { %v2686_v46 = vpack.c.bf16 %v729_v38, %v728_v37  ;;  %v2688_v48 = vpack.c.bf16 %v747_v40, %v746_v39  ;;  %v739_v37 = vld [vmem:[#allocation2 + $0x1f8] sm:$0xff] }
 0x24c   : > { %v468_v62 = vsel %vm343_vm2, %v466_v51, %v467_v52  ;;  %v474_v1 = vsel %vm343_vm2, %v463_v49, %v466_v51  ;;  %v475_v63 = vsel %vm343_vm2, %v467_v52, %v472_v55  ;;  %v731_v49 = vld [vmem:[#allocation2 + $0x1b8] sm:$0xff]  ;;  %v748_v51 = vld [vmem:[#allocation2 + $0x240] sm:$0xff]  ;;  %v749_v52 = vld [vmem:[#allocation2 + $0x248] sm:$0xff]  ;;  %v2720_v55 = vpack.c.bf16 %v763_v45, %v762_v43 }
 0x24d   : > { %v479_v3 = vrot.slane %v474_v1, 1  ;;  %v480_v4 = vrot.slane %v468_v62, 1  ;;  %v487_v6 = vrot.slane %v474_v1, 2  ;;  %v488_v7 = vrot.slane %v468_v62, 2 }
 0x24e   : > { %v490_v10 = vrot.slane %v475_v63, 2  ;;  %v482_v17 = vrot.slane %v475_v63, 1  ;;  %v733_v63 = vld [vmem:[#allocation2 + $0x1c8] sm:$0xff] }
 0x24f   : > { %v481_v18 = vsel %vm478_vm5, %v479_v3, %v480_v4  ;;  %v489_v15 = vsel %vm486_vm3, %v487_v6, %v488_v7  ;;  %v766_v3 = vld [vmem:[#allocation2 + $0x2d0] sm:$0xff] }
 0x250   : > { %610 = vmatprep.mubr.f32.mxu0 %v481_v18  ;;  %2413 = vmatprep.mubr.f32.mxu1 %v489_v15  ;;  %v491_v26 = vsel %vm486_vm3, %v488_v7, %v490_v10  ;;  %v483_v31 = vsel %vm478_vm5, %v480_v4, %v482_v17  ;;  %v767_v4 = vld [vmem:[#allocation2 + $0x2d8] sm:$0xff]  ;;  %v752_v10 = vld [vmem:[#allocation2 + $0x260] sm:$0xff]  ;;  %v769_v15 = vld [vmem:[#allocation2 + $0x2e8] sm:$0xff] }
 0x251   : > { %611 = vmatmul.mubr.f32.vlgmr.msra.gmra.mrb[2].mxu0 %v474_v1  ;;  %2414 = vmatmul.mubr.f32.vlgmr.msra.gmra.mrb[2].mxu1 %v491_v26  ;;  %v732_v1 = vld [vmem:[#allocation2 + $0x1c0] sm:$0xff]  ;;  %v2728_v17 = vpack.c.bf16 %v767_v4, %v766_v3  ;;  %v737_v26 = vld [vmem:[#allocation2 + $0x1e8] sm:$0xff] }
 0x252   : > { %2679 = vmatpush3.bf16.msra.mxu0 %v2678_v12  ;;  %615 = vmatprep.mubr.f32.mxu0 %v483_v31  ;;  %v2694_v6 = vpack.c.bf16 %v733_v63, %v732_v1  ;;  %v753_v12 = vld [vmem:[#allocation2 + $0x268] sm:$0xff]  ;;  %v768_v18 = vld [vmem:[#allocation2 + $0x2e0] sm:$0xff]  ;;  %v770_v31 = vld [vmem:[#allocation2 + $0x2f0] sm:$0xff]  ;;  %v2702_v34 = vpack.c.bf16 %v737_v26, %v736_v25 }
 0x253   : > { %2681 = vmatprep.subr.bf16.mxu0 %v2680_v22  ;;  %2711 = vmatpush3.bf16.msra.mxu1 %v3387_v5  ;;  %v730_v5 = vld [vmem:[#allocation2 + $0x1b0] sm:$0xff]  ;;  %v2698_v22 = vpack.c.bf16 %v735_v9, %v734_v8  ;;  %v2700_v23 = vpack.c.bf16 %v753_v12, %v752_v10  ;;  %v2736_v38 = vpack.c.bf16 %v771_v32, %v770_v31  ;;  %v1094_v25 = vld [vmem:[#allocation2 + $0x508] sm:$0xff]  ;;  %v1109_v26 = vld [vmem:[#allocation2 + $0x580] sm:$0xff] }
 0x254   : > { %2713 = vmatprep.subr.bf16.mxu1 %v2712_v30  ;;  %2448 = vmatprep.mubr.f32.mxu1 %v3403_v20  ;;  %v2690_v20 = vpack.c.bf16 %v731_v49, %v730_v5  ;;  %v1078_v31 = vld [vmem:[#allocation2 + $0x488] sm:$0xff] }
 0x255   : > { %616 = vmatmul.mubr.f32.gmra.mrb[4].mxu0 %v468_v62  ;;  %v2692_v62 = vpack.c.bf16 %v749_v52, %v748_v51 }
 0x256   : > { %2683 = vmatpush3.bf16.msra.mxu0 %v2682_v35  ;;  %840 = vmatprep.mubr.f32.mxu0 %v3397_v11  ;;  %v750_v11 = vld [vmem:[#allocation2 + $0x250] sm:$0xff]  ;;  %v2704_v35 = vpack.c.bf16 %v755_v28, %v754_v27  ;;  %v1110_v28 = vld [vmem:[#allocation2 + $0x588] sm:$0xff] }
 0x257   : > { %2685 = vmatprep.subr.bf16.mxu0 %v2684_v36  ;;  %2715 = vmatpush3.bf16.msra.mxu1 %v2712_v30  ;;  %v2696_v7 = vpack.c.bf16 %v751_v2, %v750_v11  ;;  %v2732_v30 = vpack.c.bf16 %v769_v15, %v768_v18  ;;  %v738_v36 = vld [vmem:[#allocation2 + $0x1f0] sm:$0xff]  ;;  %v2796_v32 = vpack.c.bf16 %v1110_v28, %v1109_v26  ;;  %v1089_v28 = vld [vmem:[#allocation2 + $0x4e0] sm:$0xff] }
 0x258   : > { %2717 = vmatprep.subr.bf16.mxu1 %v2716_v42  ;;  %v2706_v39 = vpack.c.bf16 %v739_v37, %v738_v36  ;;  %v1096_v36 = vld [vmem:[#allocation2 + $0x518] sm:$0xff]  ;;  %v1111_v37 = vld [vmem:[#allocation2 + $0x590] sm:$0xff] }
 0x25a   : > { %2687 = vmatpush3.bf16.msra.mxu0 %v2686_v46 }
 0x25b   : > { %2689 = vmatprep.subr.bf16.mxu0 %v2688_v48  ;;  %2719 = vmatpush3.bf16.msra.mxu1 %v2716_v42 }
 0x25c   : > { %2721 = vmatprep.subr.bf16.mxu1 %v2720_v55 }
 0x25e   : > { %2691 = vmatpush3.bf16.msra.mxu0 %v2690_v20 }
 0x25f   : > { %2693 = vmatprep.subr.bf16.mxu0 %v2692_v62  ;;  %2723 = vmatpush3.bf16.msra.mxu1 %v2720_v55 }
 0x260   : > { %2725 = vmatprep.subr.bf16.mxu1 %v2724_v61 }
 0x262   : > { %2695 = vmatpush3.bf16.msra.mxu0 %v2694_v6 }
 0x263   : > { %2697 = vmatprep.subr.bf16.mxu0 %v2696_v7  ;;  %2727 = vmatpush3.bf16.msra.mxu1 %v2724_v61 }
 0x264   : > { %2729 = vmatprep.subr.bf16.mxu1 %v2728_v17 }
 0x266   : > { %2699 = vmatpush3.bf16.msra.mxu0 %v2698_v22 }
 0x267   : > { %2701 = vmatprep.subr.bf16.mxu0 %v2700_v23  ;;  %2731 = vmatpush3.bf16.msra.mxu1 %v2728_v17  ;;  %v1093_v23 = vld [vmem:[#allocation2 + $0x500] sm:$0xff] }
 0x268   : > { %2733 = vmatprep.subr.bf16.mxu1 %v2732_v30  ;;  %v2764_v27 = vpack.c.bf16 %v1094_v25, %v1093_v23  ;;  %v1106_v23 = vld [vmem:[#allocation2 + $0x568] sm:$0xff]  ;;  %v1121_v25 = vld [vmem:[#allocation2 + $0x5e0] sm:$0xff] }
 0x26a   : > { %2703 = vmatpush3.bf16.msra.mxu0 %v2702_v34 }
 0x26b   : > { %2705 = vmatprep.subr.bf16.mxu0 %v2704_v35  ;;  %2735 = vmatpush3.bf16.msra.mxu1 %v2732_v30  ;;  %v1077_v30 = vld [vmem:[#allocation2 + $0x480] sm:$0xff]  ;;  %v1095_v35 = vld [vmem:[#allocation2 + $0x510] sm:$0xff] }
 0x26c   : > { %2737 = vmatprep.subr.bf16.mxu1 %v2736_v38  ;;  %v2766_v34 = vpack.c.bf16 %v1078_v31, %v1077_v30  ;;  %v1090_v30 = vld [vmem:[#allocation2 + $0x4e8] sm:$0xff] }
 0x26e   : > { %2707 = vmatpush3.bf16.msra.mxu0 %v2706_v39  ;;  %v1112_v39 = vld [vmem:[#allocation2 + $0x598] sm:$0xff] }
 0x26f   : > { %2739 = vmatpush3.bf16.msra.mxu1 %v2736_v38  ;;  %2740 = vmatprep.subr.bf16.mxu0 %v3199_v0  ;;  %v2768_v38 = vpack.c.bf16 %v1096_v36, %v1095_v35  ;;  %v1108_v35 = vld [vmem:[#allocation2 + $0x578] sm:$0xff]  ;;  %v1123_v36 = vld [vmem:[#allocation2 + $0x5f0] sm:$0xff] }
 0x270   : > { %2765 = vmatprep.subr.bf16.mxu1 %v2764_v27  ;;  %v1122_v27 = vld [vmem:[#allocation2 + $0x5e8] sm:$0xff] }
 0x271   : > { %2064 = vmatmul.mubr.msk.f32.vlgmr.msra.gmra.mrb[6].mxu0 %vm2063_vm6, %v3322_v14  ;;  %v544_v14 = vsub.s32 3, %v3365_v56  ;;  %v2820_v31 = vpack.c.bf16 %v1122_v27, %v1121_v25 }
 0x272   : > { %845 = vmatprep.mubr.f32.mxu0 %v3400_v16  ;;  %2449 = vmatmul.mubr.f32.vlgmr.msra.gmra.mrb[4].mxu1 %v3405_v13 }
 0x273   : > { %2742 = vmatpush3.bf16.msra.mxu0 %v3325_v19  ;;  %2767 = vmatpush3.bf16.msra.mxu1 %v2766_v34  ;;  %v1107_v34 = vld [vmem:[#allocation2 + $0x570] sm:$0xff] }
 0x274   : > { %2743 = vmatprep.subr.bf16.mxu0 %v3199_v0  ;;  %2769 = vmatprep.subr.bf16.mxu1 %v2768_v38  ;;  %v1124_v38 = vld [vmem:[#allocation2 + $0x5f8] sm:$0xff] }
 0x275   : > { %846 = vmatmul.mubr.f32.gmra.mrb[8].mxu0 %v3331_v21 }
 0x276   : > { %2483 = vmatprep.mubr.msk.f32.mxu0 %vm3200_vm1, %v3201_v53 }
 0x277   : > { %2745 = vmatpush3.bf16.msra.mxu0 %v3334_v24  ;;  %v545_v24 = vrot.slane %v3371_v58, %v544_v14  ;;  %v1079_v14 = vld [vmem:[#allocation2 + $0x490] sm:$0xff] }
 0x278   : > { %2746 = vmatprep.subr.bf16.mxu0 %v3199_v0 }
 0x27b   : > { %2748 = vmatpush3.bf16.msra.mxu0 %v3338_v29 }
 0x27c   : > { %2749 = vmatprep.subr.bf16.mxu0 %v3199_v0 }
 0x27f   : > { %2751 = vmatpush3.bf16.msra.mxu0 %v3344_v41 }
 0x280   : > { %2752 = vmatprep.subr.bf16.mxu0 %v3199_v0 }
 0x283   : > { %2754 = vmatpush3.bf16.msra.mxu0 %v3348_v44 }
 0x284   : > { %2755 = vmatprep.subr.bf16.mxu0 %v3199_v0 }
 0x287   : > { %2757 = vmatpush3.bf16.msra.mxu0 %v3352_v47 }
 0x288   : > { %2758 = vmatprep.subr.bf16.mxu0 %v3199_v0 }
 0x28b   : > { %2760 = vmatpush3.bf16.msra.mxu0 %v3356_v50 }
 0x28c   : > { %2761 = vmatprep.subr.bf16.mxu0 %v3199_v0  ;;  %v774_v0 = vsub.s32 4, %v3365_v56 }
 0x28e   : > { %v775_v45 = vrot.slane %v3371_v58, %v774_v0 }
 0x28f   : > { %2763 = vmatpush3.bf16.msra.mxu0 %v3361_v54 }
 0x290   : > { %2797 = vmatprep.subr.bf16.mxu0 %v2796_v32 }
 0x324   : > { %v2140_v19 = vpop.f32.mrb[2].mxu0  ;;  %v2415_v21 = vpop.f32.mrb[2].mxu1 }
 0x325   : > { %v2141_v29 = vpop.f32.mrb[3].mxu0  ;;  %v687_v41 = vpop.f32.mrb[3].mxu1 }
 0x326   : > { %v2142_v44 = vadd.f32 %v2141_v29, %v2140_v19  ;;  %v1080_v19 = vld [vmem:[#allocation2 + $0x498] sm:$0xff]  ;;  %v1097_v29 = vld [vmem:[#allocation2 + $0x520] sm:$0xff] }
 0x328   : > { %v613_v16 = vadd.f32 %v2142_v44, %v545_v24  ;;  %v2143_v13 = vpop.f32.mrb[4].mxu0  ;;  %v1113_v44 = vld [vmem:[#allocation2 + $0x5a0] sm:$0xff] }
 0x329   : > { %v2144_v47 = vpop.f32.mrb[5].mxu0 }
 0x32a   : > { %v3451_v40 = vadd.f32 %v687_v41, %v613_v16  ;;  %v2145_v42 = vadd.f32 %v2144_v47, %v2143_v13  ;;  %v1098_v41 = vld [vmem:[#allocation2 + $0x528] sm:$0xff]  ;;  %v1081_v47 = vld [vmem:[#allocation2 + $0x4a0] sm:$0xff] }
 0x32b   : > { %v2772_v16 = vpack.c.bf16 %v1098_v41, %v1097_v29  ;;  %v1114_v13 = vld [vmem:[#allocation2 + $0x5a8] sm:$0xff]  ;;  %v1430_v29 = vld [vmem:[#allocation4 + $0x318] sm:$0xff] }
 0x32c   : > { %v618_v50 = vadd.f32 %v2145_v42, %v545_v24  ;;  %v2770_v24 = vpack.c.bf16 %v1080_v19, %v1079_v14  ;;  %v1082_v42 = vld [vmem:[#allocation2 + $0x4a8] sm:$0xff]  ;;  %v1092_v14 = vld [vmem:[#allocation2 + $0x4f8] sm:$0xff]  ;;  %v2824_v19 = vpack.c.bf16 %v1124_v38, %v1123_v36 }
 0x32d   : > { %v2774_v0 = vpack.c.bf16 %v1082_v42, %v1081_v47 }
 0x32e   : > { %v3453_v43 = vadd.f32 %v2415_v21, %v618_v50  ;;  %v2800_v21 = vpack.c.bf16 %v1112_v39, %v1111_v37  ;;  %2771 = vmatpush3.bf16.msra.mxu1 %v2770_v24  ;;  %v2804_v50 = vpack.c.bf16 %v1114_v13, %v1113_v44  ;;  %v2792_v37 = vpack.c.bf16 %v1108_v35, %v1107_v34  ;;  %v1091_v39 = vld [vmem:[#allocation2 + $0x4f0] sm:$0xff]  ;;  %v1428_v24 = vld [vmem:[#allocation4 + $0x308] sm:$0xff] }
 0x32f   : > { %2773 = vmatprep.subr.bf16.mxu1 %v2772_v16  ;;  %v2828_v41 = vpack.c.bf16 %v1430_v29, %v1428_v24  ;;  %v1492_v44 = vld [vmem:[#allocation4 + $0x508] sm:$0xff]  ;;  %v1494_v16 = vld [vmem:[#allocation4 + $0x518] sm:$0xff] }
 0x330   : > { %v2892_v13 = vpack.c.bf16 %v1494_v16, %v1492_v44  ;;  %v1438_v29 = vld [vmem:[#allocation4 + $0x358] sm:$0xff]  ;;  %v1495_v44 = vld [vmem:[#allocation4 + $0x520] sm:$0xff]  ;;  %v1497_v16 = vld [vmem:[#allocation4 + $0x530] sm:$0xff] }
 0x332   : > { %2775 = vmatpush3.bf16.msra.mxu1 %v2774_v0 }
 0x344   : > { %v2196_v54 = vpop.f32.mrb[6].mxu0 }
 0x345   : > { %v2197_v46 = vpop.f32.mrb[7].mxu0  ;;  %v2450_v48 = vpop.f32.mrb[4].mxu1 }
 0x346   : > { %v2198_v5 = vadd.f32 %v2197_v46, %v2196_v54  ;;  %v917_v49 = vpop.f32.mrb[5].mxu1  ;;  %v1099_v54 = vld [vmem:[#allocation2 + $0x530] sm:$0xff] }
 0x347   : > { %v1115_v46 = vld [vmem:[#allocation2 + $0x5b0] sm:$0xff] }
 0x348   : > { %v2199_v51 = vpop.f32.mrb[8].mxu0  ;;  %v843_v52 = vadd.f32 %v2198_v5, %v775_v45  ;;  %v1116_v5 = vld [vmem:[#allocation2 + $0x5b8] sm:$0xff] }
 0x349   : > { %v2200_v55 = vpop.f32.mrb[9].mxu0 }
 0x34a   : > { %v2201_v59 = vadd.f32 %v2200_v55, %v2199_v51  ;;  %v3457_v60 = vadd.f32 %v917_v49, %v843_v52  ;;  %v1083_v49 = vld [vmem:[#allocation2 + $0x4b0] sm:$0xff]  ;;  %v1084_v51 = vld [vmem:[#allocation2 + $0x4b8] sm:$0xff]  ;;  %v2808_v52 = vpack.c.bf16 %v1116_v5, %v1115_v46 }
 0x34b   : > { %v2778_v55 = vpack.c.bf16 %v1084_v51, %v1083_v49 }
 0x34c   : > { %v848_v20 = vadd.f32 %v2201_v59, %v775_v45  ;;  %v933_v63 = vmul.f32 %v3457_v60, %v3457_v60  ;;  %v1100_v45 = vld [vmem:[#allocation2 + $0x538] sm:$0xff]  ;;  %v1101_v59 = vld [vmem:[#allocation2 + $0x540] sm:$0xff] }
 0x34e   : > { %v3459_v62 = vadd.f32 %v2450_v48, %v848_v20  ;;  %v2776_v48 = vpack.c.bf16 %v1100_v45, %v1099_v54  ;;  %v1102_v20 = vld [vmem:[#allocation2 + $0x548] sm:$0xff] }
 0x350   : > { %v926_v1 = vadd.f32 %v3459_v62, %v3457_v60  ;;  %v934_v11 = vmul.f32 %v3459_v62, %v3459_v62  ;;  %2777 = vmatprep.subr.bf16.mxu1 %v2776_v48  ;;  %v1022_v48 = vrot.slane %v3371_v58, 4 }
 0x351   : > { %2779 = vmatpush3.bf16.msra.mxu1 %v2778_v55 }
 0x352   : > { %v927_v2 = vrot.slane %v926_v1, 4  ;;  %v935_v61 = vadd.f32 %v934_v11, %v933_v63  ;;  %v2780_v63 = vpack.c.bf16 %v1102_v20, %v1101_v59  ;;  %v1118_v11 = vld [vmem:[#allocation2 + $0x5c8] sm:$0xff]  ;;  %v1041_v20 = vsub.s32 6, %v3365_v56 }
 0x354   : > { %v928_v3 = vadd.f32 %v927_v2, %v926_v1  ;;  %v936_v4 = vrot.slane %v935_v61, 4  ;;  %v1117_v1 = vld [vmem:[#allocation2 + $0x5c0] sm:$0xff]  ;;  %2781 = vmatprep.subr.bf16.mxu1 %v2780_v63 }
 0x355   : > { %v1085_v2 = vld [vmem:[#allocation2 + $0x4c0] sm:$0xff] }
 0x356   : > { %v929_v6 = vrot.slane %v928_v3, 2  ;;  %v937_v7 = vadd.f32 %v936_v4, %v935_v61  ;;  %v1086_v61 = vld [vmem:[#allocation2 + $0x4c8] sm:$0xff] }
 0x357   : > { %v2782_v4 = vpack.c.bf16 %v1086_v61, %v1085_v2 }
 0x358   : > { %v930_v8 = vadd.f32 %v929_v6, %v928_v3  ;;  %v938_v9 = vrot.slane %v937_v7, 2  ;;  %v2812_v3 = vpack.c.bf16 %v1118_v11, %v1117_v1  ;;  %v1103_v6 = vld [vmem:[#allocation2 + $0x550] sm:$0xff] }
 0x359   : > { %2783 = vmatpush3.bf16.msra.mxu1 %v2782_v4 }
 0x35a   : > { %v931_v10 = vrot.slane %v930_v8, 1  ;;  %v939_v12 = vadd.f32 %v938_v9, %v937_v7  ;;  %v1104_v7 = vld [vmem:[#allocation2 + $0x558] sm:$0xff] }
 0x35b   : > { %v2784_v9 = vpack.c.bf16 %v1104_v7, %v1103_v6 }
 0x35c   : > { %v940_v17 = vrot.slane %v939_v12, 1  ;;  %v932_v18 = vadd.f32 %v931_v10, %v930_v8  ;;  %v1119_v8 = vld [vmem:[#allocation2 + $0x5d0] sm:$0xff]  ;;  %v1120_v10 = vld [vmem:[#allocation2 + $0x5d8] sm:$0xff] }
 0x35d   : > { %2785 = vmatprep.subr.bf16.mxu1 %v2784_v9 }
 0x35e   : > { %v941_v15 = vadd.f32 %v940_v17, %v939_v12  ;;  %v1087_v12 = vld [vmem:[#allocation2 + $0x4d0] sm:$0xff]  ;;  %v1088_v17 = vld [vmem:[#allocation2 + $0x4d8] sm:$0xff] }
 0x360   : > { %v942_v22 = vsel %vm343_vm2, %v932_v18, %v941_v15  ;;  %v2816_v18 = vpack.c.bf16 %v1120_v10, %v1119_v8  ;;  %v2786_v15 = vpack.c.bf16 %v1088_v17, %v1087_v12  ;;  %v1427_v12 = vld [vmem:[#allocation4 + $0x300] sm:$0xff]  ;;  %v1429_v17 = vld [vmem:[#allocation4 + $0x310] sm:$0xff] }
 0x361   : > { %2484 = vmatmul.mubr.f32.vlgmr.msra.gmra.mrb[10].mxu0 %v942_v22  ;;  %v1105_v22 = vld [vmem:[#allocation2 + $0x560] sm:$0xff]  ;;  %v2830_v35 = vpack.c.bf16 %v1429_v17, %v1427_v12  ;;  %v1445_v12 = vld [vmem:[#allocation4 + $0x390] sm:$0xff] }
 0x362   : > { %2799 = vmatpush3.bf16.msra.mxu0 %v2796_v32  ;;  %2787 = vmatpush3.bf16.msra.mxu1 %v2786_v15  ;;  %v2788_v26 = vpack.c.bf16 %v1106_v23, %v1105_v22  ;;  %v2790_v32 = vpack.c.bf16 %v1090_v30, %v1089_v28  ;;  %v1434_v22 = vld [vmem:[#allocation4 + $0x338] sm:$0xff]  ;;  %v1493_v23 = vld [vmem:[#allocation4 + $0x510] sm:$0xff]  ;;  %v1496_v30 = vld [vmem:[#allocation4 + $0x528] sm:$0xff] }
 0x363   : > { %2801 = vmatprep.subr.bf16.mxu0 %v2800_v21 }
 0x364   : > { %2789 = vmatprep.subr.bf16.mxu1 %v2788_v26 }
 0x366   : > { %2803 = vmatpush3.bf16.msra.mxu0 %v2800_v21  ;;  %2791 = vmatpush3.bf16.msra.mxu1 %v2790_v32  ;;  %v2794_v21 = vpack.c.bf16 %v1092_v14, %v1091_v39  ;;  %v1431_v39 = vld [vmem:[#allocation4 + $0x320] sm:$0xff]  ;;  %v1433_v14 = vld [vmem:[#allocation4 + $0x330] sm:$0xff] }
 0x367   : > { %2805 = vmatprep.subr.bf16.mxu0 %v2804_v50  ;;  %2793 = vmatprep.subr.bf16.mxu1 %v2792_v37 }
 0x36a   : > { %2807 = vmatpush3.bf16.msra.mxu0 %v2804_v50  ;;  %2795 = vmatpush3.bf16.msra.mxu1 %v2794_v21 }
 0x36b   : > { %2809 = vmatprep.subr.bf16.mxu0 %v2808_v52  ;;  %2893 = vmatprep.subr.bf16.mxu1 %v2892_v13 }
 0x36e   : > { %2811 = vmatpush3.bf16.msra.mxu0 %v2808_v52 }
 0x36f   : > { %2813 = vmatprep.subr.bf16.mxu0 %v2812_v3 }
 0x372   : > { %2815 = vmatpush3.bf16.msra.mxu0 %v2812_v3 }
 0x373   : > { %2817 = vmatprep.subr.bf16.mxu0 %v2816_v18 }
 0x376   : > { %2819 = vmatpush3.bf16.msra.mxu0 %v2816_v18  ;;  %v1432_v18 = vld [vmem:[#allocation4 + $0x328] sm:$0xff] }
 0x377   : > { %2821 = vmatprep.subr.bf16.mxu0 %v2820_v31  ;;  %v2832_v38 = vpack.c.bf16 %v1434_v22, %v1432_v18  ;;  %v1448_v18 = vld [vmem:[#allocation4 + $0x3a8] sm:$0xff]  ;;  %v1447_v22 = vld [vmem:[#allocation4 + $0x3a0] sm:$0xff] }
 0x37a   : > { %2823 = vmatpush3.bf16.msra.mxu0 %v2820_v31  ;;  %v1498_v31 = vld [vmem:[#allocation4 + $0x538] sm:$0xff] }
 0x37b   : > { %2825 = vmatprep.subr.bf16.mxu0 %v2824_v19 }
 0x37e   : > { %2827 = vmatpush3.bf16.msra.mxu0 %v2824_v19  ;;  %v1436_v19 = vld [vmem:[#allocation4 + $0x348] sm:$0xff] }
 0x37f   : > { %2829 = vmatprep.subr.bf16.mxu0 %v2828_v41  ;;  %v2896_v41 = vpack.c.bf16 %v1498_v31, %v1496_v30  ;;  %v1453_v30 = vld [vmem:[#allocation4 + $0x3d0] sm:$0xff]  ;;  %v1456_v31 = vld [vmem:[#allocation4 + $0x3e8] sm:$0xff] }
 0x434   : > { %v1009_v47 = vpop.f32.mrb[10].mxu0 }
 0x435   : > { %v1013_v42 = vmul.f32 0.00390625, %v1009_v47  ;;  %v2485_v50 = vpop.f32.mrb[11].mxu0  ;;  %v1500_v47 = vld [vmem:[#allocation4 + $0x548] sm:$0xff] }
 0x436   : > { %v2834_v50 = vpack.c.bf16 %v1433_v14, %v1431_v39  ;;  %v1462_v39 = vld [vmem:[#allocation4 + $0x418] sm:$0xff] }
 0x437   : > { %v1014_v0 = vmul.f32 %v1013_v42, %v1013_v42 }
 0x439   : > { %v1016_v54 = vrot.slane %v1014_v0, 7  ;;  %v2836_v0 = vpack.c.bf16 %v1438_v29, %v1436_v19  ;;  %v1464_v29 = vld [vmem:[#allocation4 + $0x428] sm:$0xff] }
 0x43b   : > { %v1018_v45 = vsub.f32 %v1013_v42, %v1016_v54  ;;  %v1435_v54 = vld [vmem:[#allocation4 + $0x340] sm:$0xff] }
 0x43d   : > { %v1019_v46 = vadd.f32 1e-05, %v1018_v45  ;;  %v1437_v45 = vld [vmem:[#allocation4 + $0x350] sm:$0xff] }
 0x43f   : > { %3102 = vrsqrt.f32 %v1019_v46  ;;  %v1440_v46 = vld [vmem:[#allocation4 + $0x368] sm:$0xff] }
 0x449   : > { %v3103_v5 = vpop.eup %3102 }
 0x44a   : > { %v1024_v49 = vmul.f32 %v3103_v5, %v1022_v48  ;;  %v2898_v48 = vpack.c.bf16 %v1497_v16, %v1495_v44  ;;  %v1442_v5 = vld [vmem:[#allocation4 + $0x378] sm:$0xff] }
 0x44c   : > { %v1026_v51 = vrot.slane %v1024_v49, 1  ;;  %v1036_v59 = vrot.slane %v1024_v49, %v3409_v33 }
 0x44e   : > { %v1028_v52 = vmul.f32 %v1026_v51, %v1013_v42  ;;  %v1037_v63 = vmul.f32 %v1036_v59, %v3457_v60  ;;  %v1038_v11 = vmul.f32 %v1036_v59, %v3459_v62  ;;  %v1491_v62 = vld [vmem:[#allocation4 + $0x500] sm:$0xff]  ;;  %v1502_v42 = vld [vmem:[#allocation4 + $0x558] sm:$0xff] }
 0x44f   : > { %v2894_v21 = vpack.c.bf16 %v1493_v23, %v1491_v62  ;;  %v2900_v49 = vpack.c.bf16 %v1502_v42, %v1500_v47  ;;  %v1499_v51 = vld [vmem:[#allocation4 + $0x540] sm:$0xff]  ;;  %v1506_v59 = vld [vmem:[#allocation4 + $0x578] sm:$0xff]  ;;  %v1449_v62 = vld [vmem:[#allocation4 + $0x3b0] sm:$0xff] }
 0x450   : > { %v1030_v55 = vrot.slane %v1028_v52, 2  ;;  %v1501_v52 = vld [vmem:[#allocation4 + $0x550] sm:$0xff]  ;;  %v1452_v23 = vld [vmem:[#allocation4 + $0x3c8] sm:$0xff] }
 0x451   : > { %v1465_v47 = vld [vmem:[#allocation4 + $0x430] sm:$0xff]  ;;  %v1468_v42 = vld [vmem:[#allocation4 + $0x448] sm:$0xff] }
 0x452   : > { %v1032_v1 = vsub.f32 %v3371_v58, %v1030_v55  ;;  %v1504_v55 = vld [vmem:[#allocation4 + $0x568] sm:$0xff] }
 0x454   : > { %v1042_v2 = vrot.slane %v1032_v1, %v1041_v20  ;;  %v2838_v20 = vpack.c.bf16 %v1437_v45, %v1435_v54  ;;  %v2840_v1 = vpack.c.bf16 %v1442_v5, %v1440_v46  ;;  %v1467_v45 = vld [vmem:[#allocation4 + $0x440] sm:$0xff]  ;;  %v1469_v46 = vld [vmem:[#allocation4 + $0x450] sm:$0xff]  ;;  %v1474_v5 = vld [vmem:[#allocation4 + $0x478] sm:$0xff] }
 0x456   : > { %v1043_v61 = vadd.f32 %v1042_v2, %v1037_v63  ;;  %v1044_v3 = vadd.f32 %v1042_v2, %v1038_v11  ;;  %v1439_v63 = vld [vmem:[#allocation4 + $0x360] sm:$0xff]  ;;  %v1441_v11 = vld [vmem:[#allocation4 + $0x370] sm:$0xff]  ;;  %v1444_v2 = vld [vmem:[#allocation4 + $0x388] sm:$0xff] }
 0x458   : > { %v1045_v4 = vmax.f32 %v1043_v61, 0.0  ;;  %v1046_v6 = vmax.f32 %v1044_v3, 0.0  ;;  %v2902_v61 = vpack.c.bf16 %v1501_v52, %v1499_v51  ;;  %v1446_v3 = vld [vmem:[#allocation4 + $0x398] sm:$0xff]  ;;  %v1471_v52 = vld [vmem:[#allocation4 + $0x460] sm:$0xff] }
 0x45a   : > { %v1048_v7 = vrot.slane %v1045_v4, 1  ;;  %v1051_v8 = vrot.slane %v1045_v4, 7  ;;  %v1052_v9 = vrot.slane %v1046_v6, 7  ;;  %v1057_v10 = vrot.slane %v1046_v6, 5  ;;  %v1503_v6 = vld [vmem:[#allocation4 + $0x560] sm:$0xff] }
 0x45b   : > { %v2904_v4 = vpack.c.bf16 %v1506_v59, %v1504_v55  ;;  %v1473_v55 = vld [vmem:[#allocation4 + $0x470] sm:$0xff] }
 0x45c   : > { %v1053_v15 = vsel %vm343_vm2, %v1051_v8, %v1052_v9  ;;  %v1059_v58 = vsel %vm343_vm2, %v1048_v7, %v1051_v8  ;;  %v1060_v60 = vsel %vm343_vm2, %v1052_v9, %v1057_v10  ;;  %v1505_v7 = vld [vmem:[#allocation4 + $0x570] sm:$0xff]  ;;  %v2842_v8 = vpack.c.bf16 %v1441_v11, %v1439_v63  ;;  %v1443_v10 = vld [vmem:[#allocation4 + $0x380] sm:$0xff] }
 0x45d   : > { %v1063_v25 = vrot.slane %v1059_v58, 1  ;;  %v1064_v26 = vrot.slane %v1053_v15, 1  ;;  %v1070_v27 = vrot.slane %v1059_v58, 2  ;;  %v1071_v28 = vrot.slane %v1053_v15, 2  ;;  %v1507_v11 = vld [vmem:[#allocation4 + $0x580] sm:$0xff] }
 0x45e   : > { %v1073_v32 = vrot.slane %v1060_v60, 2  ;;  %v1066_v34 = vrot.slane %v1060_v60, 1  ;;  %v2844_v9 = vpack.c.bf16 %v1446_v3, %v1444_v2  ;;  %v2906_v17 = vpack.c.bf16 %v1505_v7, %v1503_v6  ;;  %v1509_v2 = vld [vmem:[#allocation4 + $0x590] sm:$0xff]  ;;  %v1476_v3 = vld [vmem:[#allocation4 + $0x488] sm:$0xff]  ;;  %v1475_v7 = vld [vmem:[#allocation4 + $0x480] sm:$0xff] }
 0x45f   : > { %v1065_v36 = vsel %vm478_vm5, %v1063_v25, %v1064_v26  ;;  %v1072_v37 = vsel %vm486_vm3, %v1070_v27, %v1071_v28  ;;  %v1454_v25 = vld [vmem:[#allocation4 + $0x3d8] sm:$0xff]  ;;  %v2874_v59 = vpack.c.bf16 %v1473_v55, %v1471_v52 }
 0x460   : > { %1193 = vmatprep.mubr.f32.mxu1 %v1065_v36  ;;  %2518 = vmatprep.mubr.f32.mxu0 %v1072_v37  ;;  %v1074_v24 = vsel %vm486_vm3, %v1071_v28, %v1073_v32  ;;  %v1067_v13 = vsel %vm478_vm5, %v1064_v26, %v1066_v34  ;;  %v2850_v26 = vpack.c.bf16 %v1449_v62, %v1447_v22  ;;  %v1451_v28 = vld [vmem:[#allocation4 + $0x3c0] sm:$0xff]  ;;  %v1458_v32 = vld [vmem:[#allocation4 + $0x3f8] sm:$0xff]  ;;  %v1457_v37 = vld [vmem:[#allocation4 + $0x3f0] sm:$0xff] }
 0x461   : > { %1194 = vmatmul.mubr.f32.vlgmr.msra.gmra.mrb[6].mxu1 %v1059_v58  ;;  %2519 = vmatmul.mubr.f32.vlgmr.msra.gmra.mrb[12].mxu0 %v1074_v24  ;;  %v2846_v58 = vpack.c.bf16 %v1445_v12, %v1443_v10  ;;  %v2852_v27 = vpack.c.bf16 %v1454_v25, %v1452_v23  ;;  %v2854_v34 = vpack.c.bf16 %v1453_v30, %v1451_v28  ;;  %v1455_v36 = vld [vmem:[#allocation4 + $0x3e0] sm:$0xff]  ;;  %v1461_v24 = vld [vmem:[#allocation4 + $0x410] sm:$0xff]  ;;  %v1512_v10 = vld [vmem:[#allocation4 + $0x5a8] sm:$0xff] }
 0x462   : > { %1198 = vmatprep.mubr.f32.mxu1 %v1067_v13  ;;  %2831 = vmatpush1.bf16.msra.mxu0 %v2830_v35  ;;  %v2856_v35 = vpack.c.bf16 %v1458_v32, %v1456_v31  ;;  %v2858_v14 = vpack.c.bf16 %v1457_v37, %v1455_v36  ;;  %v1463_v13 = vld [vmem:[#allocation4 + $0x420] sm:$0xff]  ;;  %v1514_v12 = vld [vmem:[#allocation4 + $0x5b8] sm:$0xff]  ;;  %v1481_v25 = vld [vmem:[#allocation4 + $0x4b0] sm:$0xff] }
 0x463   : > { %2833 = vmatprep.subr.bf16.mxu0 %v2832_v38  ;;  %2895 = vmatpush1.bf16.msra.mxu1 %v2894_v21  ;;  %v1460_v38 = vld [vmem:[#allocation4 + $0x408] sm:$0xff]  ;;  %v1459_v21 = vld [vmem:[#allocation4 + $0x400] sm:$0xff]  ;;  %v1482_v22 = vld [vmem:[#allocation4 + $0x4b8] sm:$0xff] }
 0x464   : > { %2897 = vmatprep.subr.bf16.mxu1 %v2896_v41  ;;  %v2860_v19 = vpack.c.bf16 %v1462_v39, %v1460_v38  ;;  %v1466_v41 = vld [vmem:[#allocation4 + $0x438] sm:$0xff]  ;;  %v2862_v44 = vpack.c.bf16 %v1461_v24, %v1459_v21  ;;  %v1479_v23 = vld [vmem:[#allocation4 + $0x4a0] sm:$0xff]  ;;  %v1517_v32 = vld [vmem:[#allocation4 + $0x5d0] sm:$0xff] }
 0x465   : > { %1199 = vmatmul.mubr.f32.gmra.mrb[8].mxu1 %v1053_v15  ;;  %v1450_v15 = vld [vmem:[#allocation4 + $0x3b8] sm:$0xff]  ;;  %v2864_v16 = vpack.c.bf16 %v1466_v41, %v1464_v29  ;;  %v1515_v31 = vld [vmem:[#allocation4 + $0x5c0] sm:$0xff]  ;;  %v1485_v39 = vld [vmem:[#allocation4 + $0x4d0] sm:$0xff] }
 0x466   : > { %2835 = vmatpush1.bf16.msra.mxu0 %v2834_v50  ;;  %1664 = vmatprep.mubr.f32.mxu1 %v3201_v53  ;;  %v2848_v60 = vpack.c.bf16 %v1450_v15, %v1448_v18  ;;  %v1470_v50 = vld [vmem:[#allocation4 + $0x458] sm:$0xff]  ;;  %v1511_v18 = vld [vmem:[#allocation4 + $0x5a0] sm:$0xff]  ;;  %v1513_v15 = vld [vmem:[#allocation4 + $0x5b0] sm:$0xff] }
 0x467   : > { %2837 = vmatprep.subr.bf16.mxu0 %v2836_v0  ;;  %2899 = vmatpush1.bf16.msra.mxu1 %v2898_v48  ;;  %v2866_v0 = vpack.c.bf16 %v1465_v47, %v1463_v13  ;;  %v2868_v54 = vpack.c.bf16 %v1470_v50, %v1468_v42  ;;  %v1472_v48 = vld [vmem:[#allocation4 + $0x468] sm:$0xff]  ;;  %v1518_v28 = vld [vmem:[#allocation4 + $0x5d8] sm:$0xff]  ;;  %v1483_v38 = vld [vmem:[#allocation4 + $0x4c0] sm:$0xff] }
 0x468   : > { %2901 = vmatprep.subr.bf16.mxu1 %v2900_v49  ;;  %v2870_v49 = vpack.c.bf16 %v1469_v46, %v1467_v45  ;;  %v2872_v51 = vpack.c.bf16 %v1474_v5, %v1472_v48  ;;  %v1486_v36 = vld [vmem:[#allocation4 + $0x4d8] sm:$0xff]  ;;  %v1519_v29 = vld [vmem:[#allocation4 + $0x5e0] sm:$0xff]  ;;  %v1521_v41 = vld [vmem:[#allocation4 + $0x5f0] sm:$0xff]  ;;  %v1127_v48 = vsub.s32 7, %v3365_v56 }
 0x469   : > { %v1522_v21 = vld [vmem:[#allocation4 + $0x5f8] sm:$0xff]  ;;  %v1487_v47 = vld [vmem:[#allocation4 + $0x4e0] sm:$0xff]  ;;  %v1489_v42 = vld [vmem:[#allocation4 + $0x4f0] sm:$0xff] }
 0x46a   : > { %2839 = vmatpush1.bf16.msra.mxu0 %v2838_v20  ;;  %v1508_v20 = vld [vmem:[#allocation4 + $0x588] sm:$0xff]  ;;  %v1490_v13 = vld [vmem:[#allocation4 + $0x4f8] sm:$0xff] }
 0x46b   : > { %2841 = vmatprep.subr.bf16.mxu0 %v2840_v1  ;;  %2903 = vmatpush1.bf16.msra.mxu1 %v2902_v61  ;;  %v1510_v1 = vld [vmem:[#allocation4 + $0x598] sm:$0xff]  ;;  %v2910_v61 = vpack.c.bf16 %v1509_v2, %v1507_v11 }
 0x46c   : > { %2905 = vmatprep.subr.bf16.mxu1 %v2904_v4  ;;  %v2908_v63 = vpack.c.bf16 %v1510_v1, %v1508_v20  ;;  %v1478_v4 = vld [vmem:[#allocation4 + $0x498] sm:$0xff] }
 0x46d   : > { %v2876_v6 = vpack.c.bf16 %v1478_v4, %v1476_v3  ;;  %v1308_v45 = vld [vmem:[#allocation4 + $0x18] sm:$0xff] }
 0x46e   : > { %2843 = vmatpush1.bf16.msra.mxu0 %v2842_v8  ;;  %v1477_v8 = vld [vmem:[#allocation4 + $0x490] sm:$0xff] }
 0x46f   : > { %2845 = vmatprep.subr.bf16.mxu0 %v2844_v9  ;;  %2907 = vmatpush1.bf16.msra.mxu1 %v2906_v17  ;;  %v2878_v9 = vpack.c.bf16 %v1477_v8, %v1475_v7  ;;  %v2912_v17 = vpack.c.bf16 %v1514_v12, %v1512_v10  ;;  %v1305_v8 = vld [vmem:[#allocation4] sm:$0xff]  ;;  %v1282_v10 = vrot.slane %v3453_v43, 7 }
 0x470   : > { %2909 = vmatprep.subr.bf16.mxu1 %v2908_v63 }
 0x472   : > { %2847 = vmatpush1.bf16.msra.mxu0 %v2846_v58  ;;  %v2914_v58 = vpack.c.bf16 %v1513_v15, %v1511_v18 }
 0x473   : > { %2849 = vmatprep.subr.bf16.mxu0 %v2848_v60  ;;  %2911 = vmatpush1.bf16.msra.mxu1 %v2910_v61  ;;  %v1480_v60 = vld [vmem:[#allocation4 + $0x4a8] sm:$0xff] }
 0x474   : > { %2913 = vmatprep.subr.bf16.mxu1 %v2912_v17  ;;  %v2880_v62 = vpack.c.bf16 %v1482_v22, %v1480_v60  ;;  %v3495_v17 = vrot.slane %v3451_v40, 7  ;;  %v1310_v22 = vld [vmem:[#allocation4 + $0x28] sm:$0xff] }
 0x476   : > { %2851 = vmatpush1.bf16.msra.mxu0 %v2850_v26  ;;  %v2882_v26 = vpack.c.bf16 %v1481_v25, %v1479_v23 }
 0x477   : > { %2853 = vmatprep.subr.bf16.mxu0 %v2852_v27  ;;  %2915 = vmatpush1.bf16.msra.mxu1 %v2914_v58  ;;  %v1516_v27 = vld [vmem:[#allocation4 + $0x5c8] sm:$0xff] }
 0x478   : > { %v2916_v30 = vpack.c.bf16 %v1518_v28, %v1516_v27  ;;  %v1381_v28 = vld [vmem:[#allocation4 + $0x260] sm:$0xff] }
 0x47a   : > { %2855 = vmatpush1.bf16.msra.mxu0 %v2854_v34  ;;  %v2918_v34 = vpack.c.bf16 %v1517_v32, %v1515_v31  ;;  %2917 = vmatprep.subr.bf16.mxu1 %v2916_v30  ;;  %v1309_v30 = vld [vmem:[#allocation4 + $0x20] sm:$0xff]  ;;  %v1311_v31 = vld [vmem:[#allocation4 + $0x30] sm:$0xff]  ;;  %v3508_v32 = vsel %vm343_vm2, %v3495_v17, %v1282_v10 }
 0x47b   : > { %2857 = vmatprep.subr.bf16.mxu0 %v2856_v35  ;;  %v1484_v35 = vld [vmem:[#allocation4 + $0x4c8] sm:$0xff] }
 0x47c   : > { %v2884_v37 = vpack.c.bf16 %v1486_v36, %v1484_v35  ;;  %2919 = vmatpush1.bf16.msra.mxu1 %v2918_v34 }
 0x47e   : > { %2859 = vmatpush1.bf16.msra.mxu0 %v2858_v14  ;;  %v2886_v14 = vpack.c.bf16 %v1485_v39, %v1483_v38  ;;  %v1314_v38 = vld [vmem:[#allocation4 + $0x48] sm:$0xff]  ;;  %v1316_v39 = vld [vmem:[#allocation4 + $0x58] sm:$0xff] }
 0x47f   : > { %2861 = vmatprep.subr.bf16.mxu0 %v2860_v19  ;;  %v1520_v19 = vld [vmem:[#allocation4 + $0x5e8] sm:$0xff] }
 0x480   : > { %v2920_v24 = vpack.c.bf16 %v1522_v21, %v1520_v19  ;;  %v2930_v21 = vpack.c.bf16 %v1311_v31, %v1309_v30  ;;  %v1337_v30 = vld [vmem:[#allocation4 + $0x100] sm:$0xff]  ;;  %v1339_v31 = vld [vmem:[#allocation4 + $0x110] sm:$0xff] }
 0x482   : > { %2863 = vmatpush1.bf16.msra.mxu0 %v2862_v44  ;;  %v1488_v44 = vld [vmem:[#allocation4 + $0x4e8] sm:$0xff]  ;;  %2921 = vmatprep.subr.bf16.mxu1 %v2920_v24  ;;  %v1292_v24 = vrot.slane %v3508_v32, 1 }
 0x483   : > { %2865 = vmatprep.subr.bf16.mxu0 %v2864_v16  ;;  %v2922_v16 = vpack.c.bf16 %v1521_v41, %v1519_v29  ;;  %v2888_v50 = vpack.c.bf16 %v1490_v13, %v1488_v44  ;;  %v2932_v29 = vpack.c.bf16 %v1316_v39, %v1314_v38  ;;  %v1313_v41 = vld [vmem:[#allocation4 + $0x40] sm:$0xff]  ;;  %v1315_v44 = vld [vmem:[#allocation4 + $0x50] sm:$0xff] }
 0x484   : > { %v1341_v38 = vld [vmem:[#allocation4 + $0x120] sm:$0xff]  ;;  %v1343_v39 = vld [vmem:[#allocation4 + $0x130] sm:$0xff] }
 0x485   : > { %2923 = vmatpush1.bf16.msra.mxu1 %v2922_v16 }
 0x486   : > { %2867 = vmatpush1.bf16.msra.mxu0 %v2866_v0  ;;  %v2890_v0 = vpack.c.bf16 %v1489_v42, %v1487_v47  ;;  %v1318_v47 = vld [vmem:[#allocation4 + $0x68] sm:$0xff]  ;;  %v1320_v42 = vld [vmem:[#allocation4 + $0x78] sm:$0xff] }
 0x487   : > { %2869 = vmatprep.subr.bf16.mxu0 %v2868_v54  ;;  %v1306_v54 = vld [vmem:[#allocation4 + $0x8] sm:$0xff] }
 0x488   : > { %v2924_v46 = vpack.c.bf16 %v1308_v45, %v1306_v54  ;;  %v2936_v54 = vpack.c.bf16 %v1320_v42, %v1318_v47  ;;  %v1317_v45 = vld [vmem:[#allocation4 + $0x60] sm:$0xff]  ;;  %v1352_v47 = vld [vmem:[#allocation4 + $0x178] sm:$0xff] }
 0x48a   : > { %2871 = vmatpush1.bf16.msra.mxu0 %v2870_v49  ;;  %2925 = vmatprep.subr.bf16.mxu1 %v2924_v46  ;;  %v1319_v46 = vld [vmem:[#allocation4 + $0x70] sm:$0xff] }
 0x48b   : > { %2873 = vmatprep.subr.bf16.mxu0 %v2872_v51  ;;  %v3120_v51 = vld [vmem:[%s3568_s3] sm:$0xff] }
 0x48c   : > { %v1128_v52 = vrot.slane %v3120_v51, %v1127_v48  ;;  %v1322_v48 = vld [vmem:[#allocation4 + $0x88] sm:$0xff] }
 0x48e   : > { %2875 = vmatpush1.bf16.msra.mxu0 %v2874_v59 }
 0x48f   : > { %2877 = vmatprep.subr.bf16.mxu0 %v2876_v6 }
 0x492   : > { %2879 = vmatpush1.bf16.msra.mxu0 %v2878_v9  ;;  %v1307_v9 = vld [vmem:[#allocation4 + $0x10] sm:$0xff] }
 0x493   : > { %2881 = vmatprep.subr.bf16.mxu0 %v2880_v62  ;;  %v2926_v58 = vpack.c.bf16 %v1307_v9, %v1305_v8  ;;  %v1312_v62 = vld [vmem:[#allocation4 + $0x38] sm:$0xff]  ;;  %v1329_v9 = vld [vmem:[#allocation4 + $0xc0] sm:$0xff] }
 0x494   : > { %v2928_v36 = vpack.c.bf16 %v1312_v62, %v1310_v22  ;;  %v1333_v22 = vld [vmem:[#allocation4 + $0xe0] sm:$0xff]  ;;  %v1335_v62 = vld [vmem:[#allocation4 + $0xf0] sm:$0xff] }
 0x496   : > { %2883 = vmatpush1.bf16.msra.mxu0 %v2882_v26 }
 0x497   : > { %2885 = vmatprep.subr.bf16.mxu0 %v2884_v37 }
 0x49a   : > { %2887 = vmatpush1.bf16.msra.mxu0 %v2886_v14  ;;  %v3514_v14 = vsel %vm343_vm2, 0.0, %v3495_v17 }
 0x49b   : > { %2889 = vmatprep.subr.bf16.mxu0 %v2888_v50  ;;  %v1291_v13 = vrot.slane %v3514_v14, 1 }
 0x49d   : > { %v1293_v50 = vsel %vm478_vm5, %v1291_v13, %v1292_v24  ;;  %v1350_v13 = vld [vmem:[#allocation4 + $0x168] sm:$0xff] }
 0x49e   : > { %2891 = vmatpush1.bf16.msra.mxu0 %v2890_v0  ;;  %v2934_v0 = vpack.c.bf16 %v1315_v44, %v1313_v41  ;;  %v1345_v44 = vld [vmem:[#allocation4 + $0x140] sm:$0xff] }
 0x534   : > { %v2269_v5 = vpop.f32.mrb[6].mxu1  ;;  %v2520_v49 = vpop.f32.mrb[12].mxu0 }
 0x535   : > { %v2270_v55 = vpop.f32.mrb[7].mxu1  ;;  %v1270_v59 = vpop.f32.mrb[13].mxu0 }
 0x536   : > { %v2271_v20 = vadd.f32 %v2270_v55, %v2269_v5  ;;  %v1324_v5 = vld [vmem:[#allocation4 + $0x98] sm:$0xff]  ;;  %v1323_v55 = vld [vmem:[#allocation4 + $0x90] sm:$0xff] }
 0x537   : > { %v2940_v51 = vpack.c.bf16 %v1324_v5, %v1322_v48 }
 0x538   : > { %v1196_v1 = vadd.f32 %v2271_v20, %v1128_v52  ;;  %v2272_v63 = vpop.f32.mrb[8].mxu1  ;;  %v1328_v20 = vld [vmem:[#allocation4 + $0xb8] sm:$0xff] }
 0x539   : > { %v2273_v11 = vpop.f32.mrb[9].mxu1 }
 0x53a   : > { %v3486_v2 = vadd.f32 %v1270_v59, %v1196_v1  ;;  %v2274_v61 = vadd.f32 %v2273_v11, %v2272_v63  ;;  %v1326_v59 = vld [vmem:[#allocation4 + $0xa8] sm:$0xff]  ;;  %v1325_v11 = vld [vmem:[#allocation4 + $0xa0] sm:$0xff] }
 0x53b   : > { %v2944_v63 = vpack.c.bf16 %v1328_v20, %v1326_v59 }
 0x53c   : > { %v1403_v3 = vrot.slane %v3486_v2, 7  ;;  %v1201_v4 = vadd.f32 %v2274_v61, %v1128_v52  ;;  %v1321_v52 = vld [vmem:[#allocation4 + $0x80] sm:$0xff]  ;;  %v1327_v61 = vld [vmem:[#allocation4 + $0xb0] sm:$0xff] }
 0x53d   : > { %v2942_v1 = vpack.c.bf16 %v1323_v55, %v1321_v52  ;;  %v1358_v52 = vld [vmem:[#allocation4 + $0x1a8] sm:$0xff]  ;;  %v1360_v55 = vld [vmem:[#allocation4 + $0x1b8] sm:$0xff] }
 0x53e   : > { %v3489_v6 = vadd.f32 %v2520_v49, %v1201_v4  ;;  %v1409_v7 = vsel %vm343_vm2, 0.0, %v1403_v3  ;;  %v2938_v49 = vpack.c.bf16 %v1319_v46, %v1317_v45  ;;  %v1332_v4 = vld [vmem:[#allocation4 + $0xd8] sm:$0xff]  ;;  %v1354_v45 = vld [vmem:[#allocation4 + $0x188] sm:$0xff]  ;;  %v2976_v20 = vpack.c.bf16 %v1360_v55, %v1358_v52  ;;  %v1389_v55 = vld [vmem:[#allocation4 + $0x2a0] sm:$0xff] }
 0x53f   : > { %v1420_v18 = vrot.slane %v1409_v7, 2  ;;  %v1413_v23 = vrot.slane %v1409_v7, 1  ;;  %v2946_v7 = vpack.c.bf16 %v1327_v61, %v1325_v11  ;;  %v1356_v46 = vld [vmem:[#allocation4 + $0x198] sm:$0xff]  ;;  %v1362_v11 = vld [vmem:[#allocation4 + $0x1c8] sm:$0xff] }
 0x540   : > { %v1404_v12 = vrot.slane %v3489_v6, 7  ;;  %v2972_v5 = vpack.c.bf16 %v1356_v46, %v1354_v45  ;;  %v1364_v61 = vld [vmem:[#allocation4 + $0x1d8] sm:$0xff]  ;;  %v1385_v46 = vld [vmem:[#allocation4 + $0x280] sm:$0xff] }
 0x542   : > { %v1405_v15 = vsel %vm343_vm2, %v1403_v3, %v1404_v12  ;;  %v1410_v60 = vsel %vm343_vm2, %v1404_v12, 0.0  ;;  %v1331_v12 = vld [vmem:[#allocation4 + $0xd0] sm:$0xff] }
 0x543   : > { %v1414_v25 = vrot.slane %v1405_v15, 1  ;;  %v1421_v26 = vrot.slane %v1405_v15, 2  ;;  %v1416_v27 = vrot.slane %v1410_v60, 1  ;;  %v1423_v37 = vrot.slane %v1410_v60, 2 }
 0x545   : > { %v1415_v34 = vsel %vm478_vm5, %v1413_v23, %v1414_v25  ;;  %v1422_v35 = vsel %vm486_vm3, %v1420_v18, %v1421_v26  ;;  %v1417_v19 = vsel %vm478_vm5, %v1414_v25, %v1416_v27  ;;  %v1424_v16 = vsel %vm486_vm3, %v1421_v26, %v1423_v37  ;;  %v1334_v18 = vld [vmem:[#allocation4 + $0xe8] sm:$0xff]  ;;  %v1340_v25 = vld [vmem:[#allocation4 + $0x118] sm:$0xff] }
 0x546   : > { %1587 = vmatprep.mubr.f32.mxu0 %v1415_v34  ;;  %1665 = vmatmul.mubr.f32.vlgmr.msra.gmra.mrb[10].mxu1 %v1422_v35  ;;  %v1338_v23 = vld [vmem:[#allocation4 + $0x108] sm:$0xff]  ;;  %v2954_v26 = vpack.c.bf16 %v1335_v62, %v1333_v22  ;;  %v1344_v35 = vld [vmem:[#allocation4 + $0x138] sm:$0xff] }
 0x547   : > { %2927 = vmatpush1.bf16.msra.mxu1 %v2926_v58  ;;  %2066 = vmatmul.mubr.msk.f32.vlgmr.msra.gmra.mrb[14].mxu0 %vm3500_vm7, %v1403_v3  ;;  %v1330_v3 = vld [vmem:[#allocation4 + $0xc8] sm:$0xff]  ;;  %v2950_v58 = vpack.c.bf16 %v1331_v12, %v1329_v9  ;;  %v2956_v27 = vpack.c.bf16 %v1340_v25, %v1338_v23  ;;  %v1368_v12 = vld [vmem:[#allocation4 + $0x1f8] sm:$0xff]  ;;  %v3529_v25 = vsel %vm343_vm2, %v1282_v10, 0.0 }
 0x548   : > { %1593 = vmatprep.mubr.f32.mxu0 %v1417_v19  ;;  %1670 = vmatprep.mubr.f32.mxu1 %v3201_v53  ;;  %v2948_v8 = vpack.c.bf16 %v1332_v4, %v1330_v3  ;;  %v1342_v34 = vld [vmem:[#allocation4 + $0x128] sm:$0xff]  ;;  %v2980_v4 = vpack.c.bf16 %v1364_v61, %v1362_v11  ;;  %v1372_v62 = vld [vmem:[#allocation4 + $0x218] sm:$0xff]  ;;  %v1393_v61 = vld [vmem:[#allocation4 + $0x2c0] sm:$0xff] }
 0x549   : > { %2929 = vmatprep.subr.bf16.mxu1 %v2928_v36  ;;  %v2958_v36 = vpack.c.bf16 %v1339_v31, %v1337_v30  ;;  %v2960_v37 = vpack.c.bf16 %v1344_v35, %v1342_v34  ;;  %v1346_v19 = vld [vmem:[#allocation4 + $0x148] sm:$0xff]  ;;  %v1371_v30 = vld [vmem:[#allocation4 + $0x210] sm:$0xff]  ;;  %v1376_v34 = vld [vmem:[#allocation4 + $0x238] sm:$0xff]  ;;  %v1294_v35 = vrot.slane %v3529_v25, 1 }
 0x54a   : > { %1671 = vmatmul.mubr.f32.gmra.mrb[12].mxu1 %v1424_v16  ;;  %v1347_v16 = vld [vmem:[#allocation4 + $0x150] sm:$0xff]  ;;  %v1366_v9 = vld [vmem:[#allocation4 + $0x1e8] sm:$0xff] }
 0x54b   : > { %2931 = vmatpush1.bf16.msra.mxu1 %v2930_v21  ;;  %1594 = vmatmul.mubr.f32.gmra.mrb[16].mxu0 %v1405_v15  ;;  %v1336_v15 = vld [vmem:[#allocation4 + $0xf8] sm:$0xff]  ;;  %v2966_v42 = vpack.c.bf16 %v1347_v16, %v1345_v44  ;;  %v1370_v22 = vld [vmem:[#allocation4 + $0x208] sm:$0xff]  ;;  %v1295_v10 = vsel %vm478_vm5, %v1292_v24, %v1294_v35  ;;  %v1377_v44 = vld [vmem:[#allocation4 + $0x240] sm:$0xff] }
 0x54c   : > { %1741 = vmatprep.mubr.f32.mxu1 %v1293_v50  ;;  %2933 = vmatprep.subr.bf16.mxu1 %v2932_v29  ;;  %v2952_v60 = vpack.c.bf16 %v1336_v15, %v1334_v18  ;;  %v1348_v21 = vld [vmem:[#allocation4 + $0x158] sm:$0xff]  ;;  %v2962_v29 = vpack.c.bf16 %v1343_v39, %v1341_v38  ;;  %v2968_v50 = vpack.c.bf16 %v1352_v47, %v1350_v13  ;;  %v1374_v31 = vld [vmem:[#allocation4 + $0x228] sm:$0xff]  ;;  %v1373_v38 = vld [vmem:[#allocation4 + $0x220] sm:$0xff] }
 0x54d   : > { %v2964_v41 = vpack.c.bf16 %v1348_v21, %v1346_v19  ;;  %v2984_v15 = vpack.c.bf16 %v1368_v12, %v1366_v9  ;;  %v1375_v39 = vld [vmem:[#allocation4 + $0x230] sm:$0xff]  ;;  %v1378_v19 = vld [vmem:[#allocation4 + $0x248] sm:$0xff]  ;;  %v1380_v21 = vld [vmem:[#allocation4 + $0x258] sm:$0xff] }
 0x54e   : > { %v1379_v16 = vld [vmem:[#allocation4 + $0x250] sm:$0xff]  ;;  %v1382_v13 = vld [vmem:[#allocation4 + $0x268] sm:$0xff]  ;;  %v1384_v47 = vld [vmem:[#allocation4 + $0x278] sm:$0xff] }
 0x54f   : > { %2935 = vmatpush1.bf16.msra.mxu1 %v2934_v0  ;;  %v1349_v0 = vld [vmem:[#allocation4 + $0x160] sm:$0xff]  ;;  %v1386_v24 = vld [vmem:[#allocation4 + $0x288] sm:$0xff] }
 0x550   : > { %2937 = vmatprep.subr.bf16.mxu1 %v2936_v54  ;;  %v1351_v54 = vld [vmem:[#allocation4 + $0x170] sm:$0xff]  ;;  %v1397_v12 = vld [vmem:[#allocation4 + $0x2e0] sm:$0xff]  ;;  %v1881_v35 = vld [vmem:[#allocation2 + $0xa8] sm:$0xff] }
 0x551   : > { %v2970_v48 = vpack.c.bf16 %v1351_v54, %v1349_v0  ;;  %v1388_v0 = vld [vmem:[#allocation4 + $0x298] sm:$0xff] }
 0x552   : > { %v3004_v45 = vpack.c.bf16 %v1388_v0, %v1386_v24  ;;  %v231_v0 = vld [vmem:[%s3568_s3 + $0x8] sm:$0x7] }
 0x553   : > { %2939 = vmatpush1.bf16.msra.mxu1 %v2938_v49  ;;  %v1353_v49 = vld [vmem:[#allocation4 + $0x180] sm:$0xff] }
 0x554   : > { %2941 = vmatprep.subr.bf16.mxu1 %v2940_v51  ;;  %v1355_v51 = vld [vmem:[#allocation4 + $0x190] sm:$0xff] }
 0x555   : > { %v2974_v59 = vpack.c.bf16 %v1355_v51, %v1353_v49  ;;  %v1392_v49 = vld [vmem:[#allocation4 + $0x2b8] sm:$0xff] }
 0x557   : > { %2943 = vmatpush1.bf16.msra.mxu1 %v2942_v1  ;;  %v1357_v1 = vld [vmem:[#allocation4 + $0x1a0] sm:$0xff] }
 0x558   : > { %2945 = vmatprep.subr.bf16.mxu1 %v2944_v63  ;;  %v1359_v63 = vld [vmem:[#allocation4 + $0x1b0] sm:$0xff] }
 0x559   : > { %v2978_v3 = vpack.c.bf16 %v1359_v63, %v1357_v1  ;;  %v1396_v1 = vld [vmem:[#allocation4 + $0x2d8] sm:$0xff] }
 0x55b   : > { %2947 = vmatpush1.bf16.msra.mxu1 %v2946_v7  ;;  %v1361_v7 = vld [vmem:[#allocation4 + $0x1c0] sm:$0xff] }
 0x55c   : > { %2949 = vmatprep.subr.bf16.mxu1 %v2948_v8  ;;  %v1363_v8 = vld [vmem:[#allocation4 + $0x1d0] sm:$0xff] }
 0x55d   : > { %v2982_v18 = vpack.c.bf16 %v1363_v8, %v1361_v7  ;;  %v1400_v7 = vld [vmem:[#allocation4 + $0x2f8] sm:$0xff] }
 0x55f   : > { %2951 = vmatpush1.bf16.msra.mxu1 %v2950_v58  ;;  %v1365_v58 = vld [vmem:[#allocation4 + $0x1e0] sm:$0xff] }
 0x560   : > { %2953 = vmatprep.subr.bf16.mxu1 %v2952_v60  ;;  %v1367_v60 = vld [vmem:[#allocation4 + $0x1f0] sm:$0xff] }
 0x561   : > { %v2986_v23 = vpack.c.bf16 %v1367_v60, %v1365_v58  ;;  %v1299_v58 = vrot.slane %v3508_v32, 2  ;;  %v1298_v60 = vrot.slane %v3514_v14, 2  ;;  %v1880_v14 = vld [vmem:[#allocation2 + $0xa0] sm:$0xff] }
 0x563   : > { %2955 = vmatpush1.bf16.msra.mxu1 %v2954_v26  ;;  %v2988_v26 = vpack.c.bf16 %v1372_v62, %v1370_v22  ;;  %v1300_v22 = vsel %vm486_vm3, %v1298_v60, %v1299_v58  ;;  %v1301_v62 = vrot.slane %v3529_v25, 2  ;;  %v1882_v25 = vld [vmem:[#allocation2 + $0xb0] sm:$0xff] }
 0x564   : > { %2957 = vmatprep.subr.bf16.mxu1 %v2956_v27  ;;  %v1369_v27 = vld [vmem:[#allocation4 + $0x200] sm:$0xff] }
 0x567   : > { %2959 = vmatpush1.bf16.msra.mxu1 %v2958_v36  ;;  %v2990_v36 = vpack.c.bf16 %v1371_v30, %v1369_v27  ;;  %v1877_v27 = vld [vmem:[#allocation2 + $0x88] sm:$0xff] }
 0x568   : > { %2961 = vmatprep.subr.bf16.mxu1 %v2960_v37  ;;  %v2992_v37 = vpack.c.bf16 %v1376_v34, %v1374_v31  ;;  %v1878_v31 = vld [vmem:[#allocation2 + $0x90] sm:$0xff] }
 0x56b   : > { %2963 = vmatpush1.bf16.msra.mxu1 %v2962_v29  ;;  %v2994_v29 = vpack.c.bf16 %v1375_v39, %v1373_v38  ;;  %v1884_v38 = vld [vmem:[#allocation2 + $0xc0] sm:$0xff]  ;;  %v1885_v39 = vld [vmem:[#allocation2 + $0xc8] sm:$0xff] }
 0x56c   : > { %2965 = vmatprep.subr.bf16.mxu1 %v2964_v41  ;;  %v2996_v41 = vpack.c.bf16 %v1380_v21, %v1378_v19  ;;  %v3036_v19 = vpack.c.bf16 %v1885_v39, %v1884_v38  ;;  %v1886_v21 = vld [vmem:[#allocation2 + $0xd0] sm:$0xff]  ;;  %v1895_v38 = vrot.slane %v231_v0, %v250_v57 }
 0x56f   : > { %2967 = vmatpush1.bf16.msra.mxu1 %v2966_v42  ;;  %v2998_v42 = vpack.c.bf16 %v1379_v16, %v1377_v44  ;;  %v1889_v44 = vld [vmem:[#allocation2 + $0xe8] sm:$0xff] }
 0x570   : > { %2969 = vmatprep.subr.bf16.mxu1 %v2968_v50  ;;  %v1383_v50 = vld [vmem:[#allocation4 + $0x270] sm:$0xff] }
 0x571   : > { %v3002_v54 = vpack.c.bf16 %v1383_v50, %v1381_v28 }
 0x573   : > { %2971 = vmatpush1.bf16.msra.mxu1 %v2970_v48  ;;  %v1387_v48 = vld [vmem:[#allocation4 + $0x290] sm:$0xff] }
 0x574   : > { %2973 = vmatprep.subr.bf16.mxu1 %v2972_v5  ;;  %v1390_v5 = vld [vmem:[#allocation4 + $0x2a8] sm:$0xff]  ;;  %v3006_v51 = vpack.c.bf16 %v1387_v48, %v1385_v46 }
 0x575   : > { %v3008_v52 = vpack.c.bf16 %v1392_v49, %v1390_v5 }
 0x577   : > { %2975 = vmatpush1.bf16.msra.mxu1 %v2974_v59  ;;  %v1391_v59 = vld [vmem:[#allocation4 + $0x2b0] sm:$0xff] }
 0x578   : > { %2977 = vmatprep.subr.bf16.mxu1 %v2976_v20  ;;  %v1394_v20 = vld [vmem:[#allocation4 + $0x2c8] sm:$0xff]  ;;  %v3010_v63 = vpack.c.bf16 %v1391_v59, %v1389_v55 }
 0x579   : > { %v3012_v11 = vpack.c.bf16 %v1396_v1, %v1394_v20 }
 0x57b   : > { %2979 = vmatpush1.bf16.msra.mxu1 %v2978_v3  ;;  %v1395_v3 = vld [vmem:[#allocation4 + $0x2d0] sm:$0xff] }
 0x57c   : > { %2981 = vmatprep.subr.bf16.mxu1 %v2980_v4  ;;  %v1398_v4 = vld [vmem:[#allocation4 + $0x2e8] sm:$0xff]  ;;  %v3014_v8 = vpack.c.bf16 %v1395_v3, %v1393_v61 }
 0x57d   : > { %v3016_v9 = vpack.c.bf16 %v1400_v7, %v1398_v4 }
 0x57f   : > { %2983 = vmatpush1.bf16.msra.mxu1 %v2982_v18  ;;  %v1399_v18 = vld [vmem:[#allocation4 + $0x2f0] sm:$0xff] }
 0x580   : > { %2985 = vmatprep.subr.bf16.mxu1 %v2984_v15  ;;  %v3018_v15 = vpack.c.bf16 %v1399_v18, %v1397_v12 }
 0x583   : > { %2987 = vmatpush1.bf16.msra.mxu1 %v2986_v23  ;;  %v1302_v23 = vsel %vm486_vm3, %v1299_v58, %v1301_v62 }
 0x584   : > { %2989 = vmatprep.subr.bf16.mxu1 %v2988_v26  ;;  %v1876_v26 = vld [vmem:[#allocation2 + $0x80] sm:$0xff] }
 0x585   : > { %v3020_v30 = vpack.c.bf16 %v1877_v27, %v1876_v26 }
 0x586   : > { %2068 = vmatmul.mubr.msk.f32.vlgmr.msra.gmra.mrb[10].mxu1 %vm3500_vm7, %v3495_v17  ;;  %v3000_v17 = vpack.c.bf16 %v1384_v47, %v1382_v13  ;;  %v1890_v13 = vld [vmem:[#allocation2 + $0xf0] sm:$0xff]  ;;  %v1891_v47 = vld [vmem:[#allocation2 + $0xf8] sm:$0xff] }
 0x587   : > { %1747 = vmatprep.mubr.f32.mxu1 %v1295_v10  ;;  %2991 = vmatpush1.bf16.msra.mxu1 %v2990_v36  ;;  %v3028_v36 = vpack.c.bf16 %v1881_v35, %v1880_v14  ;;  %v1887_v10 = vld [vmem:[#allocation2 + $0xd8] sm:$0xff] }
 0x588   : > { %2993 = vmatprep.subr.bf16.mxu1 %v2992_v37  ;;  %3021 = vmatprep.subr.bf16.mxu0 %v3020_v30 }
 0x589   : > { %3023 = vmatpush3.bf16.msra.mxu0 %v3020_v30 }
 0x58a   : > { %1748 = vmatmul.mubr.f32.gmra.mrb[12].mxu1 %v3508_v32  ;;  %v1879_v32 = vld [vmem:[#allocation2 + $0x98] sm:$0xff] }
 0x58b   : > { %2995 = vmatpush1.bf16.msra.mxu1 %v2994_v29  ;;  %1818 = vmatprep.mubr.f32.mxu1 %v3201_v53  ;;  %v3024_v34 = vpack.c.bf16 %v1879_v32, %v1878_v31  ;;  %v1888_v29 = vld [vmem:[#allocation2 + $0xe0] sm:$0xff] }
 0x58c   : > { %2997 = vmatprep.subr.bf16.mxu1 %v2996_v41  ;;  %v3040_v41 = vpack.c.bf16 %v1887_v10, %v1886_v21  ;;  %v3044_v16 = vpack.c.bf16 %v1889_v44, %v1888_v29 }
 0x58d   : > { %3025 = vmatprep.subr.bf16.mxu0 %v3024_v34 }
 0x58e   : > { %3027 = vmatpush3.bf16.msra.mxu0 %v3024_v34 }
 0x58f   : > { %2999 = vmatpush1.bf16.msra.mxu1 %v2998_v42  ;;  %3029 = vmatprep.subr.bf16.mxu0 %v3028_v36  ;;  %v3048_v42 = vpack.c.bf16 %v1891_v47, %v1890_v13 }
 0x590   : > { %3001 = vmatprep.subr.bf16.mxu1 %v3000_v17 }
 0x592   : > { %3031 = vmatpush3.bf16.msra.mxu0 %v3028_v36 }
 0x593   : > { %3003 = vmatpush1.bf16.msra.mxu1 %v3002_v54  ;;  %v1832_v54 = vrot.slane %v231_v0, 1 }
 0x594   : > { %3005 = vmatprep.subr.bf16.mxu1 %v3004_v45  ;;  %v1837_v45 = vrot.slane %v231_v0, %v3409_v33 }
 0x595   : > { %v1841_v48 = vrot.slane %v1832_v54, %v3409_v33 }
 0x597   : > { %3007 = vmatpush1.bf16.msra.mxu1 %v3006_v51 }
 0x598   : > { %3009 = vmatprep.subr.bf16.mxu1 %v3008_v52 }
 0x59b   : > { %3011 = vmatpush1.bf16.msra.mxu1 %v3010_v63 }
 0x59c   : > { %3013 = vmatprep.subr.bf16.mxu1 %v3012_v11 }
 0x59f   : > { %3015 = vmatpush1.bf16.msra.mxu1 %v3014_v8 }
 0x5a0   : > { %3017 = vmatprep.subr.bf16.mxu1 %v3016_v9 }
 0x5a3   : > { %3019 = vmatpush1.bf16.msra.mxu1 %v3018_v15 }
 0x5a6   : > { %1819 = vmatmul.mubr.f32.vlgmr.msra.gmra.mrb[10].mxu1 %v1300_v22 }
 0x5a7   : > { %1824 = vmatprep.mubr.f32.mxu1 %v3201_v53  ;;  %v1883_v53 = vld [vmem:[#allocation2 + $0xb8] sm:$0xff] }
 0x5a8   : > { %v3032_v37 = vpack.c.bf16 %v1883_v53, %v1882_v25 }
 0x5aa   : > { %1825 = vmatmul.mubr.f32.gmra.mrb[12].mxu1 %v1302_v23  ;;  %3033 = vmatprep.subr.bf16.mxu0 %v3032_v37 }
 0x5ab   : > { %3035 = vmatpush3.bf16.msra.mxu0 %v3032_v37 }
 0x5ac   : > { %3037 = vmatprep.subr.bf16.mxu0 %v3036_v19 }
 0x5af   : > { %3039 = vmatpush3.bf16.msra.mxu0 %v3036_v19 }
 0x5b0   : > { %3041 = vmatprep.subr.bf16.mxu0 %v3040_v41 }
 0x5b3   : > { %3043 = vmatpush3.bf16.msra.mxu0 %v3040_v41 }
 0x5b4   : > { %3045 = vmatprep.subr.bf16.mxu0 %v3044_v16 }
 0x5b7   : > { %3047 = vmatpush3.bf16.msra.mxu0 %v3044_v16 }
 0x5b8   : > { %3049 = vmatprep.subr.bf16.mxu0 %v3048_v42 }
 0x5bb   : > { %3051 = vmatpush3.bf16.msra.mxu0 %v3048_v42 }
 0x61a   : > { %v1589_v17 = vpop.f32.mrb[14].mxu0 }
 0x61b   : > { %v1591_v28 = vpop.f32.mrb[15].mxu0 }
 0x61e   : > { %v1595_v50 = vpop.f32.mrb[16].mxu0 }
 0x61f   : > { %v1597_v24 = vpop.f32.mrb[17].mxu0 }
 0x679   : > { %v1820_v46 = vpop.f32.mrb[10].mxu1 }
 0x67a   : > { %v3052_v5 = vadd.f32 %v1820_v46, %v1589_v17  ;;  %v1822_v49 = vpop.f32.mrb[11].mxu1 }
 0x67b   : > { %v3053_v51 = vadd.f32 %v1822_v49, %v1591_v28 }
 0x67c   : > { %v1842_v52 = vadd.f32 %v3052_v5, %v1837_v45 }
 0x67d   : > { %v1843_v55 = vadd.f32 %v3053_v51, %v1841_v48  ;;  %v1826_v59 = vpop.f32.mrb[12].mxu1 }
 0x67e   : > { %v1846_v20 = vsub.f32 0.0, %v1842_v52  ;;  %v3054_v1 = vadd.f32 %v1826_v59, %v1595_v50  ;;  %v1828_v63 = vpop.f32.mrb[13].mxu1 }
 0x67f   : > { %v1847_v11 = vsub.f32 0.0, %v1843_v55  ;;  %v3055_v61 = vadd.f32 %v1828_v63, %v1597_v24 }
 0x680   : > { %v1850_v3 = vmul.f32 1.442695, %v1846_v20  ;;  %v1844_v4 = vadd.f32 %v3054_v1, %v1837_v45 }
 0x681   : > { %v1852_v7 = vmul.f32 1.442695, %v1847_v11  ;;  %v1845_v8 = vadd.f32 %v3055_v61, %v1841_v48 }
 0x682   : > { %3104 = vpow2.f32 %v1850_v3  ;;  %v1848_v9 = vsub.f32 0.0, %v1844_v4 }
 0x683   : > { %3106 = vpow2.f32 %v1852_v7  ;;  %v1849_v12 = vsub.f32 0.0, %v1845_v8 }
 0x684   : > { %v1854_v33 = vmul.f32 1.442695, %v1848_v9 }
 0x685   : > { %v1856_v18 = vmul.f32 1.442695, %v1849_v12 }
 0x686   : > { %3108 = vpow2.f32 %v1854_v33 }
 0x687   : > { %3110 = vpow2.f32 %v1856_v18 }
 0x68c   : > { %v3105_v15 = vpop.eup %3104 }
 0x68d   : > { %v3107_v58 = vpop.eup %3106  ;;  %v1858_v60 = vadd.f32 1.0, %v3105_v15 }
 0x68e   : > { %v1859_v22 = vadd.f32 1.0, %v3107_v58 }
 0x68f   : > { %3112 = vrcp.f32 %v1858_v60 }
 0x690   : > { %v3109_v62 = vpop.eup %3108  ;;  %3114 = vrcp.f32 %v1859_v22 }
 0x691   : > { %v3111_v23 = vpop.eup %3110  ;;  %v1860_v26 = vadd.f32 1.0, %v3109_v62 }
 0x692   : > { %v1861_v27 = vadd.f32 1.0, %v3111_v23 }
 0x693   : > { %3116 = vrcp.f32 %v1860_v26 }
 0x694   : > { %3118 = vrcp.f32 %v1861_v27 }
 0x699   : > { %v3113_v30 = vpop.eup %3112 }
 0x69a   : > { %v3115_v31 = vpop.eup %3114  ;;  %v1870_v32 = vmul.f32 %v3113_v30, %v3451_v40 }
 0x69b   : > { %v1872_v34 = vmul.f32 %v3115_v31, %v3486_v2 }
 0x69d   : > { %v3117_v14 = vpop.eup %3116  ;;  %v1874_v35 = vadd.f32 %v1872_v34, %v1870_v32 }
 0x69e   : > { %v3119_v36 = vpop.eup %3118  ;;  %v1871_v25 = vmul.f32 %v3117_v14, %v3453_v43 }
 0x69f   : > { %2553 = vmatprep.mubr.f32.mxu0 %v1874_v35  ;;  %v1873_v53 = vmul.f32 %v3119_v36, %v3489_v6 }
 0x6a1   : > { %v1875_v37 = vadd.f32 %v1873_v53, %v1871_v25 }
 0x6a3   : > { %2554 = vmatmul.mubr.f32.vlgmr.msra.gmra.mrb[18].mxu0 %v1875_v37 }
 0x776   : > { %v2555_v40 = vpop.f32.mrb[18].mxu0 }
 0x777   : > { %v1968_v2 = vadd.f32 %v2555_v40, %v1895_v38  ;;  %v1962_v39 = vpop.f32.mrb[19].mxu0 }
 0x778   : > { %v1963_v19 = vadd.f32 %v1962_v39, %v1895_v38 }
 0x779   : > { %1972 = vst [vmem:[%s227_s9 + $0x8] sm:$0xff] %v1968_v2 }
 0x77a   : > { %1971 = vst [vmem:[%s227_s9] sm:$0xff] %v1963_v19 }
 0x77b PF: > { %s16_s15 = sadd.s32 1, %s3191_s15  }
 0x77c   : > { %p13_p5 = scmp.ge.s32.totalorder %s16_s15, 4  }
 0x77e   :  { %15 = sbr.rel (!%p13_p5) target bundleno = 2 (0x2), region = 75 }
 0x785   :  { %1994 = vsyncpa [#allocation3], 1 }
 0x786   :  { %1996 = vsyncpa [#allocation3 + $0x1], 1 }
 0x787   :  { %1997 = vsyncpa [#allocation5], 1 }

</bundles_post_ra>
